<compile_context>
chip_gen: v6e
topology: v6e:2x2x1
jax: 0.10.0
libtpu: 0.0.40
codegen_flags: <defaults>
</compile_context>

<pallas_src>
import math
from functools import partial

import numpy as np
import jax
import jax.numpy as jnp
from jax import lax
from jax.experimental import pallas as pl
from jax.experimental.pallas import tpu as pltpu

NUM_KERNELS = 8
KS = 2 * (NUM_KERNELS - 1) + 1        # 15 = largest effective kernel size
PADW = 8                              # zero pad per side (>= 7; 8 keeps things tidy)
_SQRT2 = 1.4142135623730951


def _erf(x):
    # Abramowitz & Stegun 7.1.26 (max abs err ~1.5e-7): exact (erf-based)
    # torch.nn.GELU reproduced in f32 with only exp/mul/add (EUP-friendly).
    p = 0.3275911
    a1, a2, a3, a4, a5 = (0.254829592, -0.284496736, 1.421413741,
                          -1.453152027, 1.061405429)
    s = jnp.where(x >= 0.0, 1.0, -1.0)
    z = jnp.abs(x)
    t = 1.0 / (1.0 + p * z)
    poly = ((((a5 * t + a4) * t + a3) * t + a2) * t + a1) * t
    return s * (1.0 - poly * jnp.exp(-z * z))


def _gelu_exact(x):
    return 0.5 * x * (1.0 + _erf(x / _SQRT2))


@partial(jax.jit, static_argnames=("H", "W"))
def _conv_block_call(xT, w_eff1, b_eff1, w_eff2, b_eff2, *, H, W):
    """Inception(8) -> GELU -> Inception(8) on the period-folded 'image'.

    xT     : [B, C, H*W]   channel-first, row-flattened image (f32)
    w_eff* : [15, 15, C, C] effective (summed / NUM_KERNELS) HWIO kernels (f32)
    b_eff* : [C]            effective biases (already / NUM_KERNELS)
    returns  [B, C, H*W]    f32
    """
    B, C, L_in = xT.shape
    assert L_in == H * W

    Wp = W + 2 * PADW                 # padded width
    Hp = H + 2 * PADW                 # padded height
    # Taps whose entire receptive row (dh) / column (dw) range sits in the zero
    # padding contribute nothing -> drop them at compile time.
    a_lo, a_hi = max(0, 8 - H), min(KS, 7 + H)
    b_lo, b_hi = max(0, 8 - W), min(KS, 7 + W)
    n_a, n_b = a_hi - a_lo, b_hi - b_lo

    L = H * Wp                        # flat length of the width-padded output
    LS = Hp * Wp                      # flat length of the padded image
    LXP = LS + KS                     # slack so lane-shifted copies stay in bounds
    Lz = (n_a - 1) * Wp + L           # columns of the big matmul actually needed
    c0 = (a_lo + 1) * Wp + (b_lo - 7) # first padded-image column the matmul reads

    # Weights: fold (dh, Cout) -> M rows and (dw, Cin) -> contraction columns so
    # each conv pass is a single MXU matmul [n_a*C, n_b*C] x [n_b*C, Lz].
    def prep_w(w_eff):
        w_sl = w_eff[a_lo:a_hi, b_lo:b_hi]                 # [n_a, n_b, Cin, Cout]
        w_sl = jnp.transpose(w_sl, (0, 3, 1, 2))           # [n_a, Cout, n_b, Cin]
        return w_sl.reshape(n_a * C, n_b * C).astype(jnp.bfloat16)

    w1 = prep_w(w_eff1)
    w2 = prep_w(w_eff2)
    b1 = b_eff1.reshape(C, 1).astype(jnp.float32)
    b2 = b_eff2.reshape(C, 1).astype(jnp.float32)

    # Validity mask over the width-padded flat output: the flat-shift trick also
    # computes (finite) garbage at padding columns, which must be zeroed before
    # it becomes the second conv's padded input.
    col = jnp.arange(L, dtype=jnp.int32) % Wp
    mask = ((col >= PADW) & (col < PADW + W)).astype(jnp.float32)[None, :]

    def kernel(x_ref, w1_ref, b1_ref, w2_ref, b2_ref, mask_ref, o_ref,
               xp_ref, s_ref, z_ref):
        # ---- build the zero-padded, channel-first, row-flattened image ------
        xp_ref[...] = jnp.zeros_like(xp_ref)
        xin = x_ref[0].astype(jnp.bfloat16)                # [C, H*W]
        for h in range(H):
            dst = (PADW + h) * Wp + PADW
            xp_ref[:, dst:dst + W] = xin[:, h * W:(h + 1) * W]

        def conv_pass(w_ref, b_ref):
            # S stacks n_b lane-shifted copies of the padded image so the whole
            # (dw, Cin) reduction becomes one contraction dimension.
            xp = xp_ref[...]                               # [C, LXP] bf16
            for j in range(n_b):
                s_ref[j * C:(j + 1) * C, :] = xp[:, j:j + LS]
            # One big MXU matmul: M = n_a*C, K = n_b*C, N = Lz (lane dense).
            z_ref[...] = jnp.dot(w_ref[...], s_ref[:, c0:c0 + Lz],
                                 preferred_element_type=jnp.float32)
            # dh reduction: a few shifted f32 adds over the row-tap blocks.
            acc = jnp.zeros((C, L), jnp.float32)
            for ia in range(n_a):
                acc = acc + z_ref[ia * C:(ia + 1) * C, ia * Wp:ia * Wp + L]
            return acc + b_ref[...]

        msk = mask_ref[...]
        hid = _gelu_exact(conv_pass(w1_ref, b1_ref)) * msk
        # Masked hidden becomes the (already zero-padded) input of conv 2:
        # a single lane-dense store into the interior rows of the padded image.
        xp_ref[:, PADW * Wp:PADW * Wp + L] = hid.astype(jnp.bfloat16)
        y = conv_pass(w2_ref, b2_ref)

        # Lane-dense output store: emit the full width-padded slab (masked so
        # the padding columns are exact zeros); the wrapper strips them.
        o_ref[0, :, :] = (y * msk).astype(o_ref.dtype)

    y_pad = pl.pallas_call(
        kernel,
        out_shape=jax.ShapeDtypeStruct((B, C, L), xT.dtype),
        grid_spec=pltpu.PrefetchScalarGridSpec(
            num_scalar_prefetch=0,
            grid=(B,),
            in_specs=[
                pl.BlockSpec((1, C, L_in), lambda b: (b, 0, 0)),
                pl.BlockSpec((n_a * C, n_b * C), lambda b: (0, 0)),
                pl.BlockSpec((C, 1), lambda b: (0, 0)),
                pl.BlockSpec((n_a * C, n_b * C), lambda b: (0, 0)),
                pl.BlockSpec((C, 1), lambda b: (0, 0)),
                pl.BlockSpec((1, L), lambda b: (0, 0)),
            ],
            out_specs=pl.BlockSpec((1, C, L), lambda b: (b, 0, 0)),
            scratch_shapes=[
                pltpu.VMEM((C, LXP), jnp.bfloat16),        # padded image / hidden
                pltpu.VMEM((n_b * C, LS), jnp.bfloat16),   # dw-stacked im2col
                pltpu.VMEM((n_a * C, Lz), jnp.float32),    # per-dh partial sums
            ],
        ),
        compiler_params=pltpu.CompilerParams(
            dimension_semantics=("parallel",)),
    )(xT, w1, b1, w2, b2, mask)

    # Strip the width padding back out (cheap XLA slice, keeps the Pallas
    # output store fully lane dense).
    y = y_pad.reshape(B, C, H, Wp)[:, :, :, PADW:PADW + W].reshape(B, C, H * W)
    return y


def pallas_conv_block_nhwc(img, w_eff1, b_eff1, w_eff2, b_eff2):
    """Convenience wrapper: NHWC image in/out around the Pallas conv block."""
    B, H, W, C = img.shape
    xT = jnp.transpose(img.reshape(B, H * W, C), (0, 2, 1))
    yT = _conv_block_call(xT, w_eff1, b_eff1, w_eff2, b_eff2, H=H, W=W)
    return jnp.transpose(yT, (0, 2, 1)).reshape(B, H, W, C)


# ----------------------------------------------------------------------------
# TimesBlock (FFT period detection + Pallas conv block + softmax combine)
# ----------------------------------------------------------------------------
def fft_for_period(x, k=2):
    # TODO(synk): no Pallas FFT primitive; rfft/top-k run as plain-JAX glue
    # (the reference also pulls top_list to host via .detach().cpu().numpy()).
    xf = jnp.fft.rfft(x, axis=1)
    amp = jnp.abs(xf)                                  # [B, F, N]
    freq = amp.mean(axis=0).mean(axis=-1)              # [F]
    freq = freq.at[0].set(0.0)
    _, top = lax.top_k(freq, k)
    top_np = np.asarray(jax.device_get(top))
    top_np = np.maximum(top_np, 1)                     # guard: period = T // 0
    periods = np.maximum(x.shape[1] // top_np, 1)
    return periods, amp.mean(axis=-1)[:, top_np]       # periods [k], weights [B,k]


def times_block(x, params, seq_len, pred_len, k=3):
    B, T, N = x.shape
    assert T == seq_len + pred_len
    periods, period_weight = fft_for_period(x, k)
    res = []
    for i in range(k):
        p = int(periods[i])
        if T % p != 0:
            length = (T // p + 1) * p
            pad = jnp.zeros((B, length - T, N), x.dtype)
            xs = jnp.concatenate([x, pad], axis=1)
        else:
            length = T
            xs = x
        H, W = length // p, p
        xT = jnp.transpose(xs, (0, 2, 1))              # [B, C, length]
        yT = _conv_block_call(xT, params["w1"], params["b1"],
                              params["w2"], params["b2"], H=H, W=W)
        y = jnp.transpose(yT, (0, 2, 1))[:, :T, :]
        res.append(y)
    res = jnp.stack(res, axis=-1)                      # [B, T, N, k]
    pw = jax.nn.softmax(period_weight, axis=1)         # [B, k]
    out = jnp.sum(res * pw[:, None, None, :], axis=-1)
    return out + x


# ----------------------------------------------------------------------------
# Plain-JAX glue for the rest of TimesNet.forward
# (TokenEmbedding + PositionalEmbedding, predict_linear, LayerNorm, projection)
# ----------------------------------------------------------------------------
def _positional_embedding(T, d_model):
    position = jnp.arange(T, dtype=jnp.float32)[:, None]
    div_term = jnp.exp(jnp.arange(0, d_model, 2, dtype=jnp.float32)
                       * -(math.log(10000.0) / d_model))
    pe = jnp.zeros((T, d_model), jnp.float32)
    pe = pe.at[:, 0::2].set(jnp.sin(position * div_term))
    pe = pe.at[:, 1::2].set(jnp.cos(position * div_term))
    return pe


def _layer_norm(x, gamma, beta, eps=1e-5):
    mu = x.mean(axis=-1, keepdims=True)
    var = ((x - mu) ** 2).mean(axis=-1, keepdims=True)
    return (x - mu) * lax.rsqrt(var + eps) * gamma + beta


def timesnet_forward(x_enc, net, seq_len, pred_len, k=3):
    """x_enc: [B, seq_len] -> dec_out: [B, pred_len] (eval mode, dropout off)."""
    B = x_enc.shape[0]
    x = x_enc[:, :, None].astype(jnp.float32)              # unsqueeze(-1) -> [B, T, 1]
    # TokenEmbedding: Conv1d(k=3, circular padding, no bias) == 3 rolled matmuls.
    tw = net["tok_w"]                                       # [3, c_in, d_model]
    val = (jnp.roll(x, 1, axis=1) @ tw[0] + x @ tw[1] + jnp.roll(x, -1, axis=1) @ tw[2])
    enc = val + net["pe"][:seq_len][None]                   # + positional embedding
    # predict_linear on the time axis: [B, seq_len, d] -> [B, seq_len+pred_len, d]
    enc = jnp.einsum("btd,pt->bpd", enc, net["pl_w"]) + net["pl_b"][None, :, None]
    # Backbone: TimesBlock (Pallas conv block) + LayerNorm, e_layers times.
    for blk in net["blocks"]:
        enc = _layer_norm(times_block(enc, blk, seq_len, pred_len, k=k),
                          net["ln_g"], net["ln_b"])
    dec = enc @ net["proj_w"] + net["proj_b"]               # [B, T, 1]
    dec = dec[:, -pred_len:, :].reshape(B, -1)              # [B, pred_len]
    return dec


# ----------------------------------------------------------------------------
# Parameter init (matches the reference init schemes closely enough for a
# numerical-shape-faithful forward pass)
# ----------------------------------------------------------------------------
def init_inception_params(key, in_ch, out_ch, num_kernels=NUM_KERNELS):
    """Per-kernel HWIO weights (kaiming_normal_ fan_out/relu, zero bias) plus
    the effective 15x15 kernel with the 1/num_kernels mean folded in."""
    ws, bs = [], []
    w_eff = jnp.zeros((KS, KS, in_ch, out_ch), jnp.float32)
    b_eff = jnp.zeros((out_ch,), jnp.float32)
    for i in range(num_kernels):
        key, sub = jax.random.split(key)
        ksz = 2 * i + 1
        std = math.sqrt(2.0 / (out_ch * ksz * ksz))    # fan_out = O * kh * kw
        w = jax.random.normal(sub, (ksz, ksz, in_ch, out_ch), jnp.float32) * std
        b = jnp.zeros((out_ch,), jnp.float32)
        ws.append(w)
        bs.append(b)
        off = (KS - ksz) // 2
        w_eff = w_eff.at[off:off + ksz, off:off + ksz].add(w)
        b_eff = b_eff + b
    w_eff = w_eff / num_kernels                        # fold the mean
    b_eff = b_eff / num_kernels
    return key, ws, bs, w_eff, b_eff


def init_timesnet_params(key, *, enc_in, d_model, seq_len, pred_len, e_layers, max_len=5000):
    T = seq_len + pred_len
    # TokenEmbedding conv: kaiming_normal_(fan_in, leaky_relu) on (d_model, c_in, 3)
    key, sub = jax.random.split(key)
    std = math.sqrt(2.0 / (enc_in * 3))
    tok = jax.random.normal(sub, (3, enc_in, d_model), jnp.float32) * std
    # predict_linear: Linear(seq_len -> T)
    key, sub = jax.random.split(key)
    bound = 1.0 / math.sqrt(seq_len)
    pl_w = jax.random.uniform(sub, (T, seq_len), jnp.float32, -bound, bound)
    key, sub = jax.random.split(key)
    pl_b = jax.random.uniform(sub, (T,), jnp.float32, -bound, bound)
    # projection: Linear(d_model -> 1)
    key, sub = jax.random.split(key)
    bound = 1.0 / math.sqrt(d_model)
    proj_w = jax.random.uniform(sub, (d_model, 1), jnp.float32, -bound, bound)
    key, sub = jax.random.split(key)
    proj_b = jax.random.uniform(sub, (1,), jnp.float32, -bound, bound)
    blocks = []
    for _ in range(e_layers):
        key, _, _, w1, b1 = init_inception_params(key, d_model, d_model)
        key, _, _, w2, b2 = init_inception_params(key, d_model, d_model)
        blocks.append(dict(w1=w1, b1=b1, w2=w2, b2=b2))
    net = dict(tok_w=tok, pe=_positional_embedding(max(max_len, T), d_model),
               pl_w=pl_w, pl_b=pl_b, ln_g=jnp.ones((d_model,), jnp.float32),
               ln_b=jnp.zeros((d_model,), jnp.float32),
               proj_w=proj_w, proj_b=proj_b, blocks=blocks)
    return key, net


# ----------------------------------------------------------------------------
# Plain-JAX f32 reference for the Inception->GELU->Inception block (validation)
# ----------------------------------------------------------------------------
def _ref_inception(x_nhwc, ws, bs):
    outs = []
    for w, b in zip(ws, bs):
        p = (w.shape[0] - 1) // 2
        y = lax.conv_general_dilated(
            x_nhwc, w, (1, 1), [(p, p), (p, p)],
            dimension_numbers=("NHWC", "HWIO", "NHWC")) + b
        outs.append(y)
    return jnp.mean(jnp.stack(outs, axis=-1), axis=-1)


def _ref_conv_block(x_nhwc, w1s, b1s, w2s, b2s):
    h = jax.nn.gelu(_ref_inception(x_nhwc, w1s, b1s), approximate=False)
    return _ref_inception(h, w2s, b2s)


if __name__ == "__main__":
    B, seq_len, pred_len, d_model, enc_in, e_layers = 2, 12, 4, 16, 1, 1
    T = seq_len + pred_len
    key = jax.random.PRNGKey(0)
    key, kx = jax.random.split(key)
    x = jax.random.normal(kx, (B, T, d_model), jnp.float32)

    key, w1s, b1s, w1, b1 = init_inception_params(key, d_model, d_model)
    key, w2s, b2s, w2, b2 = init_inception_params(key, d_model, d_model)
    params = dict(w1=w1, b1=b1, w2=w2, b2=b2)

    # Sanity check: Pallas conv block (bf16 MXU, f32 accumulate) vs plain-JAX
    # f32 reference (per-kernel convs + mean, exact GELU) on several period
    # foldings, exercising the compile-time tap skipping on both axes.
    for period in (4, 8, 2):
        Hh, Ww = T // period, period
        img = x.reshape(B, Hh, Ww, d_model)
        got = pallas_conv_block_nhwc(img, w1, b1, w2, b2)
        want = _ref_conv_block(img, w1s, b1s, w2s, b2s)
        np.testing.assert_allclose(np.asarray(got), np.asarray(want),
                                   atol=3e-2, rtol=3e-2)

    # Standalone TimesBlock run (Pallas hot path).
    out = times_block(x, params, seq_len, pred_len, k=3)
    jax.block_until_ready(out)
    assert out.shape == (B, T, d_model)

    # Full TimesNet forward: DataEmbedding -> predict_linear -> TimesBlock
    # stack + LayerNorm -> projection (glue in plain JAX, conv block in Pallas).
    key, net = init_timesnet_params(key, enc_in=enc_in, d_model=d_model,
                                    seq_len=seq_len, pred_len=pred_len,
                                    e_layers=e_layers)
    key, kx2 = jax.random.split(key)
    x_enc = jax.random.normal(kx2, (B, seq_len), jnp.float32)
    dec_out = timesnet_forward(x_enc, net, seq_len, pred_len, k=3)
    jax.block_until_ready(dec_out)
    assert dec_out.shape == (B, pred_len)
    assert np.all(np.isfinite(np.asarray(dec_out)))
    print("KERNEL_OK")
</pallas_src>

<mosaic_0001>
module attributes {stable_mosaic.version = 11 : i64} {
  func.func @kernel(%arg0: i32, %arg1: memref<1x16x16xf32, #tpu.memory_space<vmem>>, %arg2: memref<112x112xbf16, #tpu.memory_space<vmem>>, %arg3: memref<16x1xf32, #tpu.memory_space<vmem>>, %arg4: memref<112x112xbf16, #tpu.memory_space<vmem>>, %arg5: memref<16x1xf32, #tpu.memory_space<vmem>>, %arg6: memref<1x80xf32, #tpu.memory_space<vmem>>, %arg7: memref<1x16x80xf32, #tpu.memory_space<vmem>>, %arg8: memref<16x415xbf16, #tpu.memory_space<vmem>>, %arg9: memref<112x400xbf16, #tpu.memory_space<vmem>>, %arg10: memref<112x200xf32, #tpu.memory_space<vmem>>) attributes {dimension_semantics = [#tpu.dimension_semantics<parallel>], iteration_bounds = array<i64: 2>, scalar_prefetch = 0 : i64, scratch_operands = 3 : i64, tpu.core_type = #tpu.core_type<tc>, window_params = [{transform_indices = @transform_0, window_bounds = array<i64: 1, 16, 16>}, {pipeline_mode = #tpu.pipeline_mode<synchronous>, transform_indices = @transform_1, window_bounds = array<i64: 112, 112>}, {pipeline_mode = #tpu.pipeline_mode<synchronous>, transform_indices = @transform_2, window_bounds = array<i64: 16, 1>}, {pipeline_mode = #tpu.pipeline_mode<synchronous>, transform_indices = @transform_3, window_bounds = array<i64: 112, 112>}, {pipeline_mode = #tpu.pipeline_mode<synchronous>, transform_indices = @transform_4, window_bounds = array<i64: 16, 1>}, {pipeline_mode = #tpu.pipeline_mode<synchronous>, transform_indices = @transform_5, window_bounds = array<i64: 1, 80>}, {transform_indices = @transform_6, window_bounds = array<i64: 1, 16, 80>}]} {
    %cst = arith.constant 0.000000e+00 : bf16
    %0 = vector.broadcast %cst : bf16 to vector<16x415xbf16>
    %c0 = arith.constant 0 : index
    %c0_0 = arith.constant 0 : index
    %1 = vector.load %arg8[%c0, %c0_0] : memref<16x415xbf16, #tpu.memory_space<vmem>>, vector<16x415xbf16>
    tpu.vector_store %arg8[%c0, %c0_0], %0 {strides = array<i32>} : memref<16x415xbf16, #tpu.memory_space<vmem>>, vector<16x415xbf16>,
    %c0_1 = arith.constant 0 : index
    %c0_2 = arith.constant 0 : index
    %c0_3 = arith.constant 0 : index
    %2 = vector.load %arg1[%c0_1, %c0_2, %c0_3] : memref<1x16x16xf32, #tpu.memory_space<vmem>>, vector<1x16x16xf32>
    %3 = vector.shape_cast %2 : vector<1x16x16xf32> to vector<16x16xf32>
    %4 = arith.truncf %3 : vector<16x16xf32> to vector<16x16xbf16>
    %5 = vector.extract_strided_slice %4 {offsets = [0, 0], sizes = [16, 4], strides = [1, 1]} : vector<16x16xbf16> to vector<16x4xbf16>
    %c0_4 = arith.constant 0 : index
    %c168 = arith.constant 168 : index
    %6 = vector.load %arg8[%c0_4, %c168] : memref<16x415xbf16, #tpu.memory_space<vmem>>, vector<16x4xbf16>
    tpu.vector_store %arg8[%c0_4, %c168], %5 {strides = array<i32>} : memref<16x415xbf16, #tpu.memory_space<vmem>>, vector<16x4xbf16>,
    %7 = vector.extract_strided_slice %4 {offsets = [0, 4], sizes = [16, 4], strides = [1, 1]} : vector<16x16xbf16> to vector<16x4xbf16>
    %c0_5 = arith.constant 0 : index
    %c188 = arith.constant 188 : index
    %8 = vector.load %arg8[%c0_5, %c188] : memref<16x415xbf16, #tpu.memory_space<vmem>>, vector<16x4xbf16>
    tpu.vector_store %arg8[%c0_5, %c188], %7 {strides = array<i32>} : memref<16x415xbf16, #tpu.memory_space<vmem>>, vector<16x4xbf16>,
    %9 = vector.extract_strided_slice %4 {offsets = [0, 8], sizes = [16, 4], strides = [1, 1]} : vector<16x16xbf16> to vector<16x4xbf16>
    %c0_6 = arith.constant 0 : index
    %c208 = arith.constant 208 : index
    %10 = vector.load %arg8[%c0_6, %c208] : memref<16x415xbf16, #tpu.memory_space<vmem>>, vector<16x4xbf16>
    tpu.vector_store %arg8[%c0_6, %c208], %9 {strides = array<i32>} : memref<16x415xbf16, #tpu.memory_space<vmem>>, vector<16x4xbf16>,
    %11 = vector.extract_strided_slice %4 {offsets = [0, 12], sizes = [16, 4], strides = [1, 1]} : vector<16x16xbf16> to vector<16x4xbf16>
    %c0_7 = arith.constant 0 : index
    %c228 = arith.constant 228 : index
    %12 = vector.load %arg8[%c0_7, %c228] : memref<16x415xbf16, #tpu.memory_space<vmem>>, vector<16x4xbf16>
    tpu.vector_store %arg8[%c0_7, %c228], %11 {strides = array<i32>} : memref<16x415xbf16, #tpu.memory_space<vmem>>, vector<16x4xbf16>,
    %c0_8 = arith.constant 0 : index
    %c0_9 = arith.constant 0 : index
    %13 = vector.load %arg6[%c0_8, %c0_9] : memref<1x80xf32, #tpu.memory_space<vmem>>, vector<1x80xf32>
    %c0_10 = arith.constant 0 : index
    %c0_11 = arith.constant 0 : index
    %14 = vector.load %arg8[%c0_10, %c0_11] : memref<16x415xbf16, #tpu.memory_space<vmem>>, vector<16x415xbf16>
    %15 = vector.extract_strided_slice %14 {offsets = [0, 0], sizes = [16, 400], strides = [1, 1]} : vector<16x415xbf16> to vector<16x400xbf16>
    %c0_12 = arith.constant 0 : index
    %c0_13 = arith.constant 0 : index
    %16 = vector.load %arg9[%c0_12, %c0_13] : memref<112x400xbf16, #tpu.memory_space<vmem>>, vector<16x400xbf16>
    tpu.vector_store %arg9[%c0_12, %c0_13], %15 {strides = array<i32>} : memref<112x400xbf16, #tpu.memory_space<vmem>>, vector<16x400xbf16>,
    %17 = vector.extract_strided_slice %14 {offsets = [0, 1], sizes = [16, 400], strides = [1, 1]} : vector<16x415xbf16> to vector<16x400xbf16>
    %c16 = arith.constant 16 : index
    %c0_14 = arith.constant 0 : index
    %18 = vector.load %arg9[%c16, %c0_14] : memref<112x400xbf16, #tpu.memory_space<vmem>>, vector<16x400xbf16>
    tpu.vector_store %arg9[%c16, %c0_14], %17 {strides = array<i32>} : memref<112x400xbf16, #tpu.memory_space<vmem>>, vector<16x400xbf16>,
    %19 = vector.extract_strided_slice %14 {offsets = [0, 2], sizes = [16, 400], strides = [1, 1]} : vector<16x415xbf16> to vector<16x400xbf16>
    %c32 = arith.constant 32 : index
    %c0_15 = arith.constant 0 : index
    %20 = vector.load %arg9[%c32, %c0_15] : memref<112x400xbf16, #tpu.memory_space<vmem>>, vector<16x400xbf16>
    tpu.vector_store %arg9[%c32, %c0_15], %19 {strides = array<i32>} : memref<112x400xbf16, #tpu.memory_space<vmem>>, vector<16x400xbf16>,
    %21 = vector.extract_strided_slice %14 {offsets = [0, 3], sizes = [16, 400], strides = [1, 1]} : vector<16x415xbf16> to vector<16x400xbf16>
    %c48 = arith.constant 48 : index
    %c0_16 = arith.constant 0 : index
    %22 = vector.load %arg9[%c48, %c0_16] : memref<112x400xbf16, #tpu.memory_space<vmem>>, vector<16x400xbf16>
    tpu.vector_store %arg9[%c48, %c0_16], %21 {strides = array<i32>} : memref<112x400xbf16, #tpu.memory_space<vmem>>, vector<16x400xbf16>,
    %23 = vector.extract_strided_slice %14 {offsets = [0, 4], sizes = [16, 400], strides = [1, 1]} : vector<16x415xbf16> to vector<16x400xbf16>
    %c64 = arith.constant 64 : index
    %c0_17 = arith.constant 0 : index
    %24 = vector.load %arg9[%c64, %c0_17] : memref<112x400xbf16, #tpu.memory_space<vmem>>, vector<16x400xbf16>
    tpu.vector_store %arg9[%c64, %c0_17], %23 {strides = array<i32>} : memref<112x400xbf16, #tpu.memory_space<vmem>>, vector<16x400xbf16>,
    %25 = vector.extract_strided_slice %14 {offsets = [0, 5], sizes = [16, 400], strides = [1, 1]} : vector<16x415xbf16> to vector<16x400xbf16>
    %c80 = arith.constant 80 : index
    %c0_18 = arith.constant 0 : index
    %26 = vector.load %arg9[%c80, %c0_18] : memref<112x400xbf16, #tpu.memory_space<vmem>>, vector<16x400xbf16>
    tpu.vector_store %arg9[%c80, %c0_18], %25 {strides = array<i32>} : memref<112x400xbf16, #tpu.memory_space<vmem>>, vector<16x400xbf16>,
    %27 = vector.extract_strided_slice %14 {offsets = [0, 6], sizes = [16, 400], strides = [1, 1]} : vector<16x415xbf16> to vector<16x400xbf16>
    %c96 = arith.constant 96 : index
    %c0_19 = arith.constant 0 : index
    %28 = vector.load %arg9[%c96, %c0_19] : memref<112x400xbf16, #tpu.memory_space<vmem>>, vector<16x400xbf16>
    tpu.vector_store %arg9[%c96, %c0_19], %27 {strides = array<i32>} : memref<112x400xbf16, #tpu.memory_space<vmem>>, vector<16x400xbf16>,
    %c0_20 = arith.constant 0 : index
    %c0_21 = arith.constant 0 : index
    %29 = vector.load %arg2[%c0_20, %c0_21] : memref<112x112xbf16, #tpu.memory_space<vmem>>, vector<112x112xbf16>
    %c0_22 = arith.constant 0 : index
    %c97 = arith.constant 97 : index
    %30 = vector.load %arg9[%c0_22, %c97] : memref<112x400xbf16, #tpu.memory_space<vmem>>, vector<112x200xbf16>
    %cst_23 = arith.constant dense<0.000000e+00> : vector<112x200xf32>
    %31 = tpu.matmul %29, %30, %cst_23 {dimension_numbers = #tpu.dot_dimension_numbers<[1], [0], [0], [1], [0, 0, 1, 1], [], []>} : vector<112x112xbf16>, vector<112x200xbf16>, vector<112x200xf32> -> vector<112x200xf32>
    %c0_24 = arith.constant 0 : index
    %c0_25 = arith.constant 0 : index
    %32 = vector.load %arg10[%c0_24, %c0_25] : memref<112x200xf32, #tpu.memory_space<vmem>>, vector<112x200xf32>
    tpu.vector_store %arg10[%c0_24, %c0_25], %31 {strides = array<i32>} : memref<112x200xf32, #tpu.memory_space<vmem>>, vector<112x200xf32>,
    %cst_26 = arith.constant 0.000000e+00 : f32
    %33 = vector.broadcast %cst_26 : f32 to vector<16x80xf32>
    %c0_27 = arith.constant 0 : index
    %c0_28 = arith.constant 0 : index
    %34 = vector.load %arg10[%c0_27, %c0_28] : memref<112x200xf32, #tpu.memory_space<vmem>>, vector<16x80xf32>
    %35 = arith.addf %33, %34 : vector<16x80xf32>
    %c16_29 = arith.constant 16 : index
    %c20 = arith.constant 20 : index
    %36 = vector.load %arg10[%c16_29, %c20] : memref<112x200xf32, #tpu.memory_space<vmem>>, vector<16x80xf32>
    %37 = arith.addf %35, %36 : vector<16x80xf32>
    %c32_30 = arith.constant 32 : index
    %c40 = arith.constant 40 : index
    %38 = vector.load %arg10[%c32_30, %c40] : memref<112x200xf32, #tpu.memory_space<vmem>>, vector<16x80xf32>
    %39 = arith.addf %37, %38 : vector<16x80xf32>
    %c48_31 = arith.constant 48 : index
    %c60 = arith.constant 60 : index
    %40 = vector.load %arg10[%c48_31, %c60] : memref<112x200xf32, #tpu.memory_space<vmem>>, vector<16x80xf32>
    %41 = arith.addf %39, %40 : vector<16x80xf32>
    %c64_32 = arith.constant 64 : index
    %c80_33 = arith.constant 80 : index
    %42 = vector.load %arg10[%c64_32, %c80_33] : memref<112x200xf32, #tpu.memory_space<vmem>>, vector<16x80xf32>
    %43 = arith.addf %41, %42 : vector<16x80xf32>
    %c80_34 = arith.constant 80 : index
    %c100 = arith.constant 100 : index
    %44 = vector.load %arg10[%c80_34, %c100] : memref<112x200xf32, #tpu.memory_space<vmem>>, vector<16x80xf32>
    %45 = arith.addf %43, %44 : vector<16x80xf32>
    %c96_35 = arith.constant 96 : index
    %c120 = arith.constant 120 : index
    %46 = vector.load %arg10[%c96_35, %c120] : memref<112x200xf32, #tpu.memory_space<vmem>>, vector<16x80xf32>
    %47 = arith.addf %45, %46 : vector<16x80xf32>
    %c0_36 = arith.constant 0 : index
    %c0_37 = arith.constant 0 : index
    %48 = vector.load %arg3[%c0_36, %c0_37] : memref<16x1xf32, #tpu.memory_space<vmem>>, vector<16x1xf32>
    %49 = vector.broadcast %48 : vector<16x1xf32> to vector<16x80xf32>
    %50 = arith.addf %47, %49 : vector<16x80xf32>
    %cst_38 = arith.constant 5.000000e-01 : f32
    %51 = vector.broadcast %cst_38 : f32 to vector<16x80xf32>
    %52 = arith.mulf %51, %50 : vector<16x80xf32>
    %cst_39 = arith.constant 1.41421354 : f32
    %53 = vector.broadcast %cst_39 : f32 to vector<16x80xf32>
    %54 = arith.divf %50, %53 : vector<16x80xf32>
    %cst_40 = arith.constant 0.000000e+00 : f32
    %55 = vector.broadcast %cst_40 : f32 to vector<16x80xf32>
    %56 = arith.cmpf oge, %54, %55 : vector<16x80xf32>
    %cst_41 = arith.constant 1.000000e+00 : f32
    %cst_42 = arith.constant -1.000000e+00 : f32
    %57 = vector.broadcast %cst_41 : f32 to vector<16x80xf32>
    %58 = vector.broadcast %cst_42 : f32 to vector<16x80xf32>
    %59 = arith.select %56, %57, %58 : vector<16x80xi1>, vector<16x80xf32>
    %60 = math.absf %54 : vector<16x80xf32>
    %cst_43 = arith.constant 0.327591091 : f32
    %61 = vector.broadcast %cst_43 : f32 to vector<16x80xf32>
    %62 = arith.mulf %61, %60 : vector<16x80xf32>
    %cst_44 = arith.constant 1.000000e+00 : f32
    %63 = vector.broadcast %cst_44 : f32 to vector<16x80xf32>
    %64 = arith.addf %63, %62 : vector<16x80xf32>
    %cst_45 = arith.constant 1.000000e+00 : f32
    %65 = vector.broadcast %cst_45 : f32 to vector<16x80xf32>
    %66 = arith.divf %65, %64 : vector<16x80xf32>
    %cst_46 = arith.constant 1.06140542 : f32
    %67 = vector.broadcast %cst_46 : f32 to vector<16x80xf32>
    %68 = arith.mulf %67, %66 : vector<16x80xf32>
    %cst_47 = arith.constant -1.45315206 : f32
    %69 = vector.broadcast %cst_47 : f32 to vector<16x80xf32>
    %70 = arith.addf %68, %69 : vector<16x80xf32>
    %71 = arith.mulf %70, %66 : vector<16x80xf32>
    %cst_48 = arith.constant 1.42141378 : f32
    %72 = vector.broadcast %cst_48 : f32 to vector<16x80xf32>
    %73 = arith.addf %71, %72 : vector<16x80xf32>
    %74 = arith.mulf %73, %66 : vector<16x80xf32>
    %cst_49 = arith.constant -0.284496725 : f32
    %75 = vector.broadcast %cst_49 : f32 to vector<16x80xf32>
    %76 = arith.addf %74, %75 : vector<16x80xf32>
    %77 = arith.mulf %76, %66 : vector<16x80xf32>
    %cst_50 = arith.constant 0.254829586 : f32
    %78 = vector.broadcast %cst_50 : f32 to vector<16x80xf32>
    %79 = arith.addf %77, %78 : vector<16x80xf32>
    %80 = arith.mulf %79, %66 : vector<16x80xf32>
    %cst_51 = arith.constant 0.000000e+00 : f32
    %81 = vector.broadcast %cst_51 : f32 to vector<16x80xf32>
    %82 = arith.subf %81, %60 : vector<16x80xf32>
    %83 = arith.mulf %82, %60 : vector<16x80xf32>
    %84 = math.exp %83 : vector<16x80xf32>
    %85 = arith.mulf %80, %84 : vector<16x80xf32>
    %cst_52 = arith.constant 1.000000e+00 : f32
    %86 = vector.broadcast %cst_52 : f32 to vector<16x80xf32>
    %87 = arith.subf %86, %85 : vector<16x80xf32>
    %88 = arith.mulf %59, %87 : vector<16x80xf32>
    %cst_53 = arith.constant 1.000000e+00 : f32
    %89 = vector.broadcast %cst_53 : f32 to vector<16x80xf32>
    %90 = arith.addf %89, %88 : vector<16x80xf32>
    %91 = arith.mulf %52, %90 : vector<16x80xf32>
    %92 = vector.broadcast %13 : vector<1x80xf32> to vector<16x80xf32>
    %93 = arith.mulf %91, %92 : vector<16x80xf32>
    %94 = arith.truncf %93 : vector<16x80xf32> to vector<16x80xbf16>
    %c0_54 = arith.constant 0 : index
    %c160 = arith.constant 160 : index
    %95 = vector.load %arg8[%c0_54, %c160] : memref<16x415xbf16, #tpu.memory_space<vmem>>, vector<16x80xbf16>
    tpu.vector_store %arg8[%c0_54, %c160], %94 {strides = array<i32>} : memref<16x415xbf16, #tpu.memory_space<vmem>>, vector<16x80xbf16>,
    %c0_55 = arith.constant 0 : index
    %c0_56 = arith.constant 0 : index
    %96 = vector.load %arg8[%c0_55, %c0_56] : memref<16x415xbf16, #tpu.memory_space<vmem>>, vector<16x415xbf16>
    %97 = vector.extract_strided_slice %96 {offsets = [0, 0], sizes = [16, 400], strides = [1, 1]} : vector<16x415xbf16> to vector<16x400xbf16>
    %c0_57 = arith.constant 0 : index
    %c0_58 = arith.constant 0 : index
    %98 = vector.load %arg9[%c0_57, %c0_58] : memref<112x400xbf16, #tpu.memory_space<vmem>>, vector<16x400xbf16>
    tpu.vector_store %arg9[%c0_57, %c0_58], %97 {strides = array<i32>} : memref<112x400xbf16, #tpu.memory_space<vmem>>, vector<16x400xbf16>,
    %99 = vector.extract_strided_slice %96 {offsets = [0, 1], sizes = [16, 400], strides = [1, 1]} : vector<16x415xbf16> to vector<16x400xbf16>
    %c16_59 = arith.constant 16 : index
    %c0_60 = arith.constant 0 : index
    %100 = vector.load %arg9[%c16_59, %c0_60] : memref<112x400xbf16, #tpu.memory_space<vmem>>, vector<16x400xbf16>
    tpu.vector_store %arg9[%c16_59, %c0_60], %99 {strides = array<i32>} : memref<112x400xbf16, #tpu.memory_space<vmem>>, vector<16x400xbf16>,
    %101 = vector.extract_strided_slice %96 {offsets = [0, 2], sizes = [16, 400], strides = [1, 1]} : vector<16x415xbf16> to vector<16x400xbf16>
    %c32_61 = arith.constant 32 : index
    %c0_62 = arith.constant 0 : index
    %102 = vector.load %arg9[%c32_61, %c0_62] : memref<112x400xbf16, #tpu.memory_space<vmem>>, vector<16x400xbf16>
    tpu.vector_store %arg9[%c32_61, %c0_62], %101 {strides = array<i32>} : memref<112x400xbf16, #tpu.memory_space<vmem>>, vector<16x400xbf16>,
    %103 = vector.extract_strided_slice %96 {offsets = [0, 3], sizes = [16, 400], strides = [1, 1]} : vector<16x415xbf16> to vector<16x400xbf16>
    %c48_63 = arith.constant 48 : index
    %c0_64 = arith.constant 0 : index
    %104 = vector.load %arg9[%c48_63, %c0_64] : memref<112x400xbf16, #tpu.memory_space<vmem>>, vector<16x400xbf16>
    tpu.vector_store %arg9[%c48_63, %c0_64], %103 {strides = array<i32>} : memref<112x400xbf16, #tpu.memory_space<vmem>>, vector<16x400xbf16>,
    %105 = vector.extract_strided_slice %96 {offsets = [0, 4], sizes = [16, 400], strides = [1, 1]} : vector<16x415xbf16> to vector<16x400xbf16>
    %c64_65 = arith.constant 64 : index
    %c0_66 = arith.constant 0 : index
    %106 = vector.load %arg9[%c64_65, %c0_66] : memref<112x400xbf16, #tpu.memory_space<vmem>>, vector<16x400xbf16>
    tpu.vector_store %arg9[%c64_65, %c0_66], %105 {strides = array<i32>} : memref<112x400xbf16, #tpu.memory_space<vmem>>, vector<16x400xbf16>,
    %107 = vector.extract_strided_slice %96 {offsets = [0, 5], sizes = [16, 400], strides = [1, 1]} : vector<16x415xbf16> to vector<16x400xbf16>
    %c80_67 = arith.constant 80 : index
    %c0_68 = arith.constant 0 : index
    %108 = vector.load %arg9[%c80_67, %c0_68] : memref<112x400xbf16, #tpu.memory_space<vmem>>, vector<16x400xbf16>
    tpu.vector_store %arg9[%c80_67, %c0_68], %107 {strides = array<i32>} : memref<112x400xbf16, #tpu.memory_space<vmem>>, vector<16x400xbf16>,
    %109 = vector.extract_strided_slice %96 {offsets = [0, 6], sizes = [16, 400], strides = [1, 1]} : vector<16x415xbf16> to vector<16x400xbf16>
    %c96_69 = arith.constant 96 : index
    %c0_70 = arith.constant 0 : index
    %110 = vector.load %arg9[%c96_69, %c0_70] : memref<112x400xbf16, #tpu.memory_space<vmem>>, vector<16x400xbf16>
    tpu.vector_store %arg9[%c96_69, %c0_70], %109 {strides = array<i32>} : memref<112x400xbf16, #tpu.memory_space<vmem>>, vector<16x400xbf16>,
    %c0_71 = arith.constant 0 : index
    %c0_72 = arith.constant 0 : index
    %111 = vector.load %arg4[%c0_71, %c0_72] : memref<112x112xbf16, #tpu.memory_space<vmem>>, vector<112x112xbf16>
    %c0_73 = arith.constant 0 : index
    %c97_74 = arith.constant 97 : index
    %112 = vector.load %arg9[%c0_73, %c97_74] : memref<112x400xbf16, #tpu.memory_space<vmem>>, vector<112x200xbf16>
    %cst_75 = arith.constant dense<0.000000e+00> : vector<112x200xf32>
    %113 = tpu.matmul %111, %112, %cst_75 {dimension_numbers = #tpu.dot_dimension_numbers<[1], [0], [0], [1], [0, 0, 1, 1], [], []>} : vector<112x112xbf16>, vector<112x200xbf16>, vector<112x200xf32> -> vector<112x200xf32>
    %c0_76 = arith.constant 0 : index
    %c0_77 = arith.constant 0 : index
    %114 = vector.load %arg10[%c0_76, %c0_77] : memref<112x200xf32, #tpu.memory_space<vmem>>, vector<112x200xf32>
    tpu.vector_store %arg10[%c0_76, %c0_77], %113 {strides = array<i32>} : memref<112x200xf32, #tpu.memory_space<vmem>>, vector<112x200xf32>,
    %cst_78 = arith.constant 0.000000e+00 : f32
    %115 = vector.broadcast %cst_78 : f32 to vector<16x80xf32>
    %c0_79 = arith.constant 0 : index
    %c0_80 = arith.constant 0 : index
    %116 = vector.load %arg10[%c0_79, %c0_80] : memref<112x200xf32, #tpu.memory_space<vmem>>, vector<16x80xf32>
    %117 = arith.addf %115, %116 : vector<16x80xf32>
    %c16_81 = arith.constant 16 : index
    %c20_82 = arith.constant 20 : index
    %118 = vector.load %arg10[%c16_81, %c20_82] : memref<112x200xf32, #tpu.memory_space<vmem>>, vector<16x80xf32>
    %119 = arith.addf %117, %118 : vector<16x80xf32>
    %c32_83 = arith.constant 32 : index
    %c40_84 = arith.constant 40 : index
    %120 = vector.load %arg10[%c32_83, %c40_84] : memref<112x200xf32, #tpu.memory_space<vmem>>, vector<16x80xf32>
    %121 = arith.addf %119, %120 : vector<16x80xf32>
    %c48_85 = arith.constant 48 : index
    %c60_86 = arith.constant 60 : index
    %122 = vector.load %arg10[%c48_85, %c60_86] : memref<112x200xf32, #tpu.memory_space<vmem>>, vector<16x80xf32>
    %123 = arith.addf %121, %122 : vector<16x80xf32>
    %c64_87 = arith.constant 64 : index
    %c80_88 = arith.constant 80 : index
    %124 = vector.load %arg10[%c64_87, %c80_88] : memref<112x200xf32, #tpu.memory_space<vmem>>, vector<16x80xf32>
    %125 = arith.addf %123, %124 : vector<16x80xf32>
    %c80_89 = arith.constant 80 : index
    %c100_90 = arith.constant 100 : index
    %126 = vector.load %arg10[%c80_89, %c100_90] : memref<112x200xf32, #tpu.memory_space<vmem>>, vector<16x80xf32>
    %127 = arith.addf %125, %126 : vector<16x80xf32>
    %c96_91 = arith.constant 96 : index
    %c120_92 = arith.constant 120 : index
    %128 = vector.load %arg10[%c96_91, %c120_92] : memref<112x200xf32, #tpu.memory_space<vmem>>, vector<16x80xf32>
    %129 = arith.addf %127, %128 : vector<16x80xf32>
    %c0_93 = arith.constant 0 : index
    %c0_94 = arith.constant 0 : index
    %130 = vector.load %arg5[%c0_93, %c0_94] : memref<16x1xf32, #tpu.memory_space<vmem>>, vector<16x1xf32>
    %131 = vector.broadcast %130 : vector<16x1xf32> to vector<16x80xf32>
    %132 = arith.addf %129, %131 : vector<16x80xf32>
    %133 = vector.broadcast %13 : vector<1x80xf32> to vector<16x80xf32>
    %134 = arith.mulf %132, %133 : vector<16x80xf32>
    %c0_95 = arith.constant 0 : index
    %c0_96 = arith.constant 0 : index
    %c0_97 = arith.constant 0 : index
    %135 = vector.load %arg7[%c0_95, %c0_96, %c0_97] : memref<1x16x80xf32, #tpu.memory_space<vmem>>, vector<1x16x80xf32>
    %136 = vector.shape_cast %135 : vector<1x16x80xf32> to vector<16x80xf32>
    %137 = vector.shape_cast %134 : vector<16x80xf32> to vector<1x16x80xf32>
    tpu.vector_store %arg7[%c0_95, %c0_96, %c0_97], %137 {strides = array<i32>} : memref<1x16x80xf32, #tpu.memory_space<vmem>>, vector<1x16x80xf32>,
    return
  }
  func.func @transform_0(%arg0: i32) -> (i32, i32, i32) {
    %c0_i32 = arith.constant 0 : i32
    %c0_i32_0 = arith.constant 0 : i32
    %c0_i32_1 = arith.constant 0 : i32
    return %arg0, %c0_i32, %c0_i32_0 : i32, i32, i32
  }
  func.func @transform_1(%arg0: i32) -> (i32, i32) {
    %c0_i32 = arith.constant 0 : i32
    %c0_i32_0 = arith.constant 0 : i32
    %c0_i32_1 = arith.constant 0 : i32
    return %c0_i32, %c0_i32_0 : i32, i32
  }
  func.func @transform_2(%arg0: i32) -> (i32, i32) {
    %c0_i32 = arith.constant 0 : i32
    %c0_i32_0 = arith.constant 0 : i32
    %c0_i32_1 = arith.constant 0 : i32
    return %c0_i32, %c0_i32_0 : i32, i32
  }
  func.func @transform_3(%arg0: i32) -> (i32, i32) {
    %c0_i32 = arith.constant 0 : i32
    %c0_i32_0 = arith.constant 0 : i32
    %c0_i32_1 = arith.constant 0 : i32
    return %c0_i32, %c0_i32_0 : i32, i32
  }
  func.func @transform_4(%arg0: i32) -> (i32, i32) {
    %c0_i32 = arith.constant 0 : i32
    %c0_i32_0 = arith.constant 0 : i32
    %c0_i32_1 = arith.constant 0 : i32
    return %c0_i32, %c0_i32_0 : i32, i32
  }
  func.func @transform_5(%arg0: i32) -> (i32, i32) {
    %c0_i32 = arith.constant 0 : i32
    %c0_i32_0 = arith.constant 0 : i32
    %c0_i32_1 = arith.constant 0 : i32
    return %c0_i32, %c0_i32_0 : i32, i32
  }
  func.func @transform_6(%arg0: i32) -> (i32, i32, i32) {
    %c0_i32 = arith.constant 0 : i32
    %c0_i32_0 = arith.constant 0 : i32
    %c0_i32_1 = arith.constant 0 : i32
    return %arg0, %c0_i32, %c0_i32_0 : i32, i32, i32
  }
}

</mosaic_0001>

<bundles_post_ra>
// kernel: _conv_block_call.1
= control target key start
LH: loop header
LB: loop body
LE: loop exit
PB: predicated region body
PF: predicated region fallthrough
CT: control target
= control target key end

     0   :  { %s2054_s21 = smov 0   ;;  %s2758_s0 = inlined_call_operand.vmem [shape: f32[2,16,16], index: 0, kind: input, shape index: {}]   ;;  %s2759_s1 = inlined_call_operand.vmem [shape: bf16[112,112], index: 1, kind: input, shape index: {}]   ;;  %s2760_s2 = inlined_call_operand.vmem [shape: f32[16,1], index: 2, kind: input, shape index: {}]   ;;  %s2761_s3 = inlined_call_operand.vmem [shape: bf16[112,112], index: 3, kind: input, shape index: {}]   ;;  %s2762_s4 = inlined_call_operand.vmem [shape: f32[16,1], index: 4, kind: input, shape index: {}]   ;;  %s2763_s5 = inlined_call_operand.vmem [shape: f32[1,80], index: 5, kind: input, shape index: {}]   ;;  %s2764_s6 = inlined_call_operand.vmem [shape: f32[2,16,80], index: 6, kind: output, shape index: {}]  }
   0x1 LB: > { %s1835_s22 = sadd.s32 4294967295, %s1998_s21   ;;  %p1839_p0 = scmp.ge.s32.totalorder %s1998_s21, 1  ;;  %s1998_s21 = sphi %s2054_s21, %s16_s21  }
   0x2   : > { %p212_p1 = scmp.lt.s32.totalorder %s1998_s21, 3 }
   0x4   : > { %p213_p2 = pnand %p1839_p0, %p212_p1 }
   0x5   : > { %p242_p3 = scmp.lt.s32.totalorder (!%p213_p2), %s1835_s22, 1  ;;  %s2001_s27 = smov (!%p213_p2), 56  }
   0x6   : > { %216 = sbr.rel (%p213_p2) target bundleno = 1664 (0x680), region = 44  ;;  %s2002_s28 = smov (!%p213_p2), 40  }
   0x7   : > { %s2003_s29 = smov (!%p213_p2), 72   ;;  %s2004_s30 = smov (!%p213_p2), 88  }
   0x8   : > { %s2005_s7 = smov (!%p213_p2), 122   ;;  %s2006_s8 = smov (!%p213_p2), 123  }
   0x9   : > { %s2007_s9 = smov (!%p213_p2), 124   ;;  %s2008_s10 = smov (!%p213_p2), 125  }
   0xa   : > { %s2009_s11 = smov (!%p213_p2), 126   ;;  %s2010_s12 = smov (!%p213_p2), 127  }
   0xb   : > { %vm254_vm0 = vcmask 1043456   ;;  %vm255_vm1 = vcmask 252932   ;;  %v2000_v0 = vmov 0   ;;  %s2771_s22 = smov (!%p242_p3, %s1835_s22), 1  ;;  %vm310_vm3 = vcmask 130052   ;;  %s2011_s13 = smov 31  }
   0xc   : > { %vm256_vm2 = vmor %vm255_vm1, %vm254_vm0  ;;  %253 = vst [vmem:[#allocation2] sm:$0xff] %v2000_v0  ;;  %775 = vmatprep.mubr.bf16.mxu0 %v2000_v0  ;;  %1954 = vset.pattern.permute.xlu1 %v2000_v0  ;;  %s1921_s23 = sshll.u32 %s2771_s22, 4  ;;  %vm274_vm5 = vcmask 355648   ;;  %vm283_vm6 = vcmask 519648   ;;  %vm292_vm7 = vcmask 683648   ;;  %vm301_vm8 = vcmask 847648  }
   0xd   : > { %258 = vst [vmem:[#allocation2 + $0x10] sm:$0xff] %v2000_v0  ;;  %257 = vst.msk [vmem:[#allocation2 + $0x8] sm:$0xff] %vm256_vm2, %v2000_v0  ;;  %1955 = vset.pattern.permute.xlu0 %v2000_v0  ;;  %1546 = vmatprep.mubr.bf16.mxu1 %v2000_v0  ;;  %s246_s26 = scalar_lea.vmem %s2758_s0, %s1921_s23  ;;  %vm468_vm9 = vcmask 998400   ;;  %vm441_vm10 = vcmask 1006592   ;;  %vm414_vm11 = vcmask 1014784   ;;  %vm387_vm12 = vcmask 1022976  }
   0xe   : > { %259 = vst.msk [vmem:[#allocation2 + $0x18] sm:$0xff] %vm256_vm2, %v2000_v0  ;;  %v260_v1 = vld [vmem:[%s246_s26] sm:$0xff]  ;;  %v261_v2 = vld [vmem:[%s246_s26 + $0x8] sm:$0xff]  ;;  %vm2106_vm4 = vmor %vm310_vm3, %vm254_vm0  ;;  %vm360_vm13 = vcmask 1031168   ;;  %vm333_vm14 = vcmask 1039360   ;;  %vm692_vm15 = vcmask 252928  }
   0xf   : > { %v1923_v3 = vpack.c.bf16 %v260_v1, %v260_v1  ;;  %v1924_v4 = vpack.c.bf16 %v261_v2, %v261_v2  ;;  %vm721_vm1 = vcmask 916480   ;;  %vm847_vm2 = vcmask 588800   ;;  %s2012_s19 = smov 108   ;;  %s2013_s20 = smov 68  }
  0x10   : > { %s2014_s24 = smov 48   ;;  %s2015_s25 = smov 28   ;;  %vm919_vm3 = vcmask 556032  }
  0x11   : > { %277 = vrot.lane.b32.xlu1 %v1923_v3, %s2001_s27  ;;  %268 = vrot.lane.b32.xlu0 %v1923_v3, %s2002_s28  ;;  %s2016_s26 = smov 8  }
  0x14   : > { %v2081_v5 = vld [vmem:[#allocation2 + $0x8] sm:$0xff] }
  0x15   : > { %279 = vrot.lane.b32.xlu1 %v1924_v4, %s2001_s27  ;;  %270 = vrot.lane.b32.xlu0 %v1924_v4, %s2002_s28  ;;  %v2085_v6 = vld [vmem:[#allocation2 + $0x18] sm:$0xff]  ;;  %312 = vst.msk [vmem:[#allocation3 + $0x8] sm:$0xff] %vm2106_vm4, %v2081_v5 }
  0x16   : > { %314 = vst.msk [vmem:[#allocation3 + $0x18] sm:$0xff] %vm2106_vm4, %v2085_v6 }
  0x19   : > { %288 = vrot.lane.b32.xlu1 %v1924_v4, %s2003_s29  ;;  %286 = vrot.lane.b32.xlu0 %v1923_v3, %s2003_s29  ;;  %s2018_s29 = smov 32  }
  0x1d   : > { %297 = vrot.lane.b32.xlu1 %v1924_v4, %s2004_s30  ;;  %295 = vrot.lane.b32.xlu0 %v1923_v3, %s2004_s30  ;;  %v2250_v55 = vld [vmem:[#allocation3 + $0x8] ss:$16 sps:$4 sm:$0xff]  }
  0x1e   : > { %1092 = vst.msk [vmem:[#allocation3 + $0x8] sm:$0xff] %vm2106_vm4, %v2081_v5  ;;  %1094 = vst.msk [vmem:[#allocation3 + $0x18] sm:$0xff] %vm2106_vm4, %v2085_v6 }
  0x21   : > { %457 = vrot.lane.b32.xlu1 %v2081_v5, %s2005_s7 }
  0x25   : > { %461 = vrot.lane.b32.xlu1 %v2085_v6, %s2005_s7 }
  0x29   : > { %430 = vrot.lane.b32.xlu1 %v2081_v5, %s2006_s8 }
  0x2d   : > { %434 = vrot.lane.b32.xlu1 %v2085_v6, %s2006_s8 }
  0x31   : > { %403 = vrot.lane.b32.xlu1 %v2081_v5, %s2007_s9 }
  0x35   : > { %407 = vrot.lane.b32.xlu1 %v2085_v6, %s2007_s9 }
  0x39   : > { %376 = vrot.lane.b32.xlu1 %v2081_v5, %s2008_s10 }
  0x3d   : > { %380 = vrot.lane.b32.xlu1 %v2085_v6, %s2008_s10 }
  0x41   : > { %349 = vrot.lane.b32.xlu1 %v2081_v5, %s2009_s11 }
  0x45   : > { %353 = vrot.lane.b32.xlu1 %v2085_v6, %s2009_s11 }
  0x49   : > { %321 = vrot.lane.b32.xlu1 %v2081_v5, %s2010_s12 }
  0x4d   : > { %325 = vrot.lane.b32.xlu1 %v2085_v6, %s2010_s12 }
  0x83   : > { %v278_v8 = vpop.permute.xlu1 %277  ;;  %v269_v9 = vpop.permute.xlu0 %268 }
  0x84   : > { %275 = vst.msk [vmem:[#allocation2 + $0x4] sm:$0xf] %vm274_vm5, %v269_v9 }
  0x85   : > { %284 = vst.msk [vmem:[#allocation2 + $0x4] sm:$0xf] %vm283_vm6, %v278_v8 }
  0x87   : > { %v280_v10 = vpop.permute.xlu1 %279  ;;  %v271_v11 = vpop.permute.xlu0 %270 }
  0x88   : > { %276 = vst.msk [vmem:[#allocation2 + $0x14] sm:$0xf] %vm274_vm5, %v271_v11  ;;  %vm942_vm5 = vcmask 392192  }
  0x89   : > { %285 = vst.msk [vmem:[#allocation2 + $0x14] sm:$0xf] %vm283_vm6, %v280_v10  ;;  %vm965_vm6 = vcmask 228352  }
  0x8b   : > { %v289_v12 = vpop.permute.xlu1 %288  ;;  %v287_v13 = vpop.permute.xlu0 %286 }
  0x8c   : > { %294 = vst.msk [vmem:[#allocation2 + $0x14] sm:$0xf] %vm292_vm7, %v289_v12  ;;  %293 = vst.msk [vmem:[#allocation2 + $0x4] sm:$0xf] %vm292_vm7, %v287_v13  ;;  %vm2765_vm7 = vcmask 64512  }
  0x8f   : > { %v298_v14 = vpop.permute.xlu1 %297  ;;  %v296_v15 = vpop.permute.xlu0 %295 }
  0x90   : > { %303 = vst.msk [vmem:[#allocation2 + $0x14] sm:$0xf] %vm301_vm8, %v298_v14  ;;  %302 = vst.msk [vmem:[#allocation2 + $0x4] sm:$0xf] %vm301_vm8, %v296_v15 }
  0x93   : > { %v2120_v16 = vpop.permute.xlu1 %457 }
  0x94   : > { %v464_v17 = vrot.slane %v2120_v16, 4 }
  0x96   : > { %v470_v18 = vsel %vm468_vm9, %v2120_v16, %v464_v17 }
  0x97   : > { %v2127_v19 = vld [vmem:[#allocation2] sm:$0xff]  ;;  %479 = vst.msk [vmem:[#allocation3 + $0xc8] sm:$0xff] %vm2106_vm4, %v470_v18  ;;  %v2131_v20 = vpop.permute.xlu1 %461  ;;  %v2140_v23 = vld [vmem:[#allocation2 + $0x10] sm:$0xff] }
  0x98   : > { %455 = vrot.lane.b32.xlu0 %v2127_v19, %s2005_s7  ;;  %v466_v21 = vrot.slane %v2131_v20, 4 }
  0x9a   : > { %v473_v22 = vsel %vm468_vm9, %v2131_v20, %v466_v21 }
  0x9b   : > { %481 = vst.msk [vmem:[#allocation3 + $0xd8] sm:$0xff] %vm2106_vm4, %v473_v22  ;;  %v2144_v24 = vpop.permute.xlu1 %430 }
  0x9c   : > { %459 = vrot.lane.b32.xlu0 %v2140_v23, %s2005_s7  ;;  %v437_v25 = vrot.slane %v2144_v24, 4 }
  0x9e   : > { %v443_v26 = vsel %vm441_vm10, %v2144_v24, %v437_v25 }
  0x9f   : > { %452 = vst.msk [vmem:[#allocation3 + $0xa8] sm:$0xff] %vm2106_vm4, %v443_v26  ;;  %v2155_v27 = vpop.permute.xlu1 %434 }
  0xa0   : > { %428 = vrot.lane.b32.xlu0 %v2127_v19, %s2006_s8  ;;  %v439_v28 = vrot.slane %v2155_v27, 4 }
  0xa2   : > { %v446_v29 = vsel %vm441_vm10, %v2155_v27, %v439_v28  ;;  %v1956_v30 = vld [vmem:[#allocation3 + $0xc8] ss:$16 sps:$4 sm:$0xff]  }
  0xa3   : > { %454 = vst.msk [vmem:[#allocation3 + $0xb8] sm:$0xff] %vm2106_vm4, %v446_v29  ;;  %v2166_v31 = vpop.permute.xlu1 %403  ;;  %690 = vrot.lane.b32.xlu1 %v1956_v30, %s2011_s13 }
  0xa4   : > { %432 = vrot.lane.b32.xlu0 %v2140_v23, %s2006_s8  ;;  %v410_v32 = vrot.slane %v2166_v31, 4 }
  0xa6   : > { %v416_v33 = vsel %vm414_vm11, %v2166_v31, %v410_v32 }
  0xa7   : > { %425 = vst.msk [vmem:[#allocation3 + $0x88] sm:$0xff] %vm2106_vm4, %v416_v33  ;;  %v2178_v34 = vpop.permute.xlu1 %407 }
  0xa8   : > { %401 = vrot.lane.b32.xlu0 %v2127_v19, %s2007_s9  ;;  %v412_v35 = vrot.slane %v2178_v34, 4 }
  0xaa   : > { %v419_v36 = vsel %vm414_vm11, %v2178_v34, %v412_v35  ;;  %v1957_v58 = vld [vmem:[#allocation3 + $0xa8] ss:$16 sps:$4 sm:$0xff]  }
  0xab   : > { %427 = vst.msk [vmem:[#allocation3 + $0x98] sm:$0xff] %vm2106_vm4, %v419_v36  ;;  %v2189_v37 = vpop.permute.xlu1 %376 }
  0xac   : > { %405 = vrot.lane.b32.xlu0 %v2140_v23, %s2007_s9  ;;  %v383_v38 = vrot.slane %v2189_v37, 4 }
  0xae   : > { %v389_v39 = vsel %vm387_vm12, %v2189_v37, %v383_v38 }
  0xaf   : > { %398 = vst.msk [vmem:[#allocation3 + $0x68] sm:$0xff] %vm2106_vm4, %v389_v39  ;;  %v2200_v40 = vpop.permute.xlu1 %380 }
  0xb0   : > { %374 = vrot.lane.b32.xlu0 %v2127_v19, %s2008_s10  ;;  %v385_v41 = vrot.slane %v2200_v40, 4 }
  0xb2   : > { %v392_v42 = vsel %vm387_vm12, %v2200_v40, %v385_v41  ;;  %v1958_v43 = vld [vmem:[#allocation3 + $0x88] ss:$16 sps:$4 sm:$0xff]  }
  0xb3   : > { %400 = vst.msk [vmem:[#allocation3 + $0x78] sm:$0xff] %vm2106_vm4, %v392_v42  ;;  %v2211_v44 = vpop.permute.xlu1 %349  ;;  %678 = vrot.lane.b32.xlu1 %v1958_v43, %s2011_s13 }
  0xb4   : > { %378 = vrot.lane.b32.xlu0 %v2140_v23, %s2008_s10  ;;  %v356_v45 = vrot.slane %v2211_v44, 4 }
  0xb6   : > { %v362_v46 = vsel %vm360_vm13, %v2211_v44, %v356_v45 }
  0xb7   : > { %371 = vst.msk [vmem:[#allocation3 + $0x48] sm:$0xff] %vm2106_vm4, %v362_v46  ;;  %v2223_v47 = vpop.permute.xlu1 %353 }
  0xb8   : > { %347 = vrot.lane.b32.xlu0 %v2127_v19, %s2009_s11  ;;  %v358_v48 = vrot.slane %v2223_v47, 4 }
  0xba   : > { %v365_v49 = vsel %vm360_vm13, %v2223_v47, %v358_v48  ;;  %v1959_v59 = vld [vmem:[#allocation3 + $0x68] ss:$16 sps:$4 sm:$0xff]  }
  0xbb   : > { %373 = vst.msk [vmem:[#allocation3 + $0x58] sm:$0xff] %vm2106_vm4, %v365_v49  ;;  %v2234_v50 = vpop.permute.xlu1 %321 }
  0xbc   : > { %351 = vrot.lane.b32.xlu0 %v2140_v23, %s2009_s11  ;;  %v328_v51 = vrot.slane %v2234_v50, 4 }
  0xbe   : > { %v335_v52 = vsel %vm333_vm14, %v2234_v50, %v328_v51 }
  0xbf   : > { %344 = vst.msk [vmem:[#allocation3 + $0x28] sm:$0xff] %vm2106_vm4, %v335_v52  ;;  %v2245_v53 = vpop.permute.xlu1 %325 }
  0xc0   : > { %319 = vrot.lane.b32.xlu0 %v2127_v19, %s2010_s12  ;;  %v330_v54 = vrot.slane %v2245_v53, 4 }
  0xc2   : > { %v338_v56 = vsel %vm333_vm14, %v2245_v53, %v330_v54  ;;  %v1961_v57 = vld [vmem:[#allocation3 + $0x48] ss:$16 sps:$4 sm:$0xff]  }
  0xc3   : > { %346 = vst.msk [vmem:[#allocation3 + $0x38] sm:$0xff] %vm2106_vm4, %v338_v56  ;;  %666 = vrot.lane.b32.xlu1 %v1961_v57, %s2011_s13 }
  0xc4   : > { %323 = vrot.lane.b32.xlu0 %v2140_v23, %s2010_s12 }
  0xc8   : > { %684 = vrot.lane.b32.xlu0 %v1957_v58, %s2011_s13 }
  0xca   : > { %v1960_v60 = vld [vmem:[#allocation3 + $0x28] ss:$16 sps:$4 sm:$0xff]  }
  0xcc   : > { %672 = vrot.lane.b32.xlu0 %v1959_v59, %s2011_s13 }
  0xd0   : > { %660 = vrot.lane.b32.xlu0 %v1960_v60, %s2011_s13 }
 0x10a   : > { %v456_v61 = vpop.permute.xlu0 %455 }
 0x10b   : > { %v463_v62 = vrot.slane %v456_v61, 4 }
 0x10d   : > { %v467_v1 = vsel %vm254_vm0, %v463_v62, %v464_v17 }
 0x10e   : > { %v460_v63 = vpop.permute.xlu0 %459  ;;  %v469_v4 = vsel %vm468_vm9, %v456_v61, %v467_v1 }
 0x10f   : > { %v465_v2 = vrot.slane %v460_v63, 4 }
 0x111   : > { %v471_v3 = vsel %vm254_vm0, %v465_v2, %v466_v21 }
 0x112   : > { %v472_v8 = vsel %vm468_vm9, %v460_v63, %v471_v3  ;;  %v429_v9 = vpop.permute.xlu0 %428 }
 0x113   : > { %v436_v10 = vrot.slane %v429_v9, 4  ;;  %v1872_v11 = vcombine.high %v469_v4, %v472_v8  ;;  %v1871_v15 = vcombine.low %v469_v4, %v472_v8  ;;  %v1854_v4 = vcombine.high %v2127_v19, %v2140_v23 }
 0x115   : > { %688 = vrot.lane.b32.xlu0 %v1872_v11, %s2011_s13  ;;  %v440_v13 = vsel %vm254_vm0, %v436_v10, %v437_v25  ;;  %v691_v8 = vpop.permute.xlu1 %690 }
 0x116   : > { %v433_v12 = vpop.permute.xlu0 %432  ;;  %v442_v17 = vsel %vm441_vm10, %v429_v9, %v440_v13 }
 0x117   : > { %v438_v14 = vrot.slane %v433_v12, 4 }
 0x119   : > { %v444_v16 = vsel %vm254_vm0, %v438_v14, %v439_v28  ;;  %686 = vrot.lane.b32.xlu0 %v1871_v15, %s2011_s13 }
 0x11a   : > { %v445_v18 = vsel %vm441_vm10, %v433_v12, %v444_v16  ;;  %v402_v20 = vpop.permute.xlu0 %401 }
 0x11b   : > { %v409_v21 = vrot.slane %v402_v20, 4  ;;  %v1869_v22 = vcombine.high %v442_v17, %v445_v18  ;;  %v1868_v27 = vcombine.low %v442_v17, %v445_v18 }
 0x11d   : > { %682 = vrot.lane.b32.xlu1 %v1869_v22, %s2011_s13  ;;  %v413_v25 = vsel %vm254_vm0, %v409_v21, %v410_v32 }
 0x11e   : > { %v406_v24 = vpop.permute.xlu0 %405  ;;  %v415_v29 = vsel %vm414_vm11, %v402_v20, %v413_v25 }
 0x11f   : > { %v411_v26 = vrot.slane %v406_v24, 4 }
 0x121   : > { %v417_v28 = vsel %vm254_vm0, %v411_v26, %v412_v35  ;;  %680 = vrot.lane.b32.xlu1 %v1868_v27, %s2011_s13 }
 0x122   : > { %v418_v30 = vsel %vm414_vm11, %v406_v24, %v417_v28  ;;  %v375_v33 = vpop.permute.xlu0 %374 }
 0x123   : > { %v382_v36 = vrot.slane %v375_v33, 4  ;;  %v1866_v39 = vcombine.high %v415_v29, %v418_v30  ;;  %v1865_v34 = vcombine.low %v415_v29, %v418_v30 }
 0x125   : > { %676 = vrot.lane.b32.xlu0 %v1866_v39, %s2011_s13  ;;  %v386_v32 = vsel %vm254_vm0, %v382_v36, %v383_v38  ;;  %v679_v10 = vpop.permute.xlu1 %678 }
 0x126   : > { %v379_v31 = vpop.permute.xlu0 %378  ;;  %v388_v43 = vsel %vm387_vm12, %v375_v33, %v386_v32 }
 0x127   : > { %v384_v42 = vrot.slane %v379_v31, 4 }
 0x129   : > { %v390_v35 = vsel %vm254_vm0, %v384_v42, %v385_v41  ;;  %674 = vrot.lane.b32.xlu0 %v1865_v34, %s2011_s13 }
 0x12a   : > { %v391_v46 = vsel %vm387_vm12, %v379_v31, %v390_v35  ;;  %v348_v49 = vpop.permute.xlu0 %347 }
 0x12b   : > { %v355_v52 = vrot.slane %v348_v49, 4  ;;  %v1863_v56 = vcombine.high %v388_v43, %v391_v46  ;;  %v1862_v40 = vcombine.low %v388_v43, %v391_v46  ;;  %v1963_v46 = vld [vmem:[%s2759_s1] sm:$0xff]  }
 0x12d   : > { %670 = vrot.lane.b32.xlu1 %v1863_v56, %s2011_s13  ;;  %v359_v38 = vsel %vm254_vm0, %v355_v52, %v356_v45  ;;  %v1965_v52 = vld [vmem:[%s2759_s1 + $0x10] sm:$0xff]   ;;  %v1966_v56 = vld [vmem:[%s2759_s1 + $0x18] sm:$0xff]  }
 0x12e   : > { %v352_v37 = vpop.permute.xlu0 %351  ;;  %v361_v58 = vsel %vm360_vm13, %v348_v49, %v359_v38  ;;  %v1964_v49 = vld [vmem:[%s2759_s1 + $0x8] sm:$0xff]  }
 0x12f   : > { %v357_v57 = vrot.slane %v352_v37, 4  ;;  %v1968_v38 = vld [vmem:[%s2759_s1 + $0x28] sm:$0xff]  }
 0x131   : > { %v363_v41 = vsel %vm254_vm0, %v357_v57, %v358_v48  ;;  %668 = vrot.lane.b32.xlu1 %v1862_v40, %s2011_s13  ;;  %v1969_v57 = vld [vmem:[%s2759_s1 + $0x30] sm:$0xff]   ;;  %v995_v40 = vld [vmem:[%s2760_s2] sm:$0xff] }
 0x132   : > { %v364_v59 = vsel %vm360_vm13, %v352_v37, %v363_v41  ;;  %v320_v60 = vpop.permute.xlu0 %319  ;;  %v1967_v37 = vld [vmem:[%s2759_s1 + $0x20] sm:$0xff]   ;;  %v996_v41 = vld [vmem:[%s2760_s2 + $0x8] sm:$0xff] }
 0x133   : > { %v327_v61 = vrot.slane %v320_v60, 4  ;;  %v1860_v62 = vcombine.high %v361_v58, %v364_v59  ;;  %v1859_v47 = vcombine.low %v361_v58, %v364_v59 }
 0x135   : > { %664 = vrot.lane.b32.xlu0 %v1860_v62, %s2011_s13  ;;  %v332_v45 = vsel %vm254_vm0, %v327_v61, %v328_v51  ;;  %v1853_v51 = vcombine.low %v2127_v19, %v2140_v23  ;;  %v667_v13 = vpop.permute.xlu1 %666 }
 0x136   : > { %v324_v44 = vpop.permute.xlu0 %323  ;;  %v334_v1 = vsel %vm333_vm14, %v320_v60, %v332_v45 }
 0x137   : > { %v329_v63 = vrot.slane %v324_v44, 4 }
 0x139   : > { %v336_v48 = vsel %vm254_vm0, %v329_v63, %v330_v54  ;;  %662 = vrot.lane.b32.xlu0 %v1859_v47, %s2011_s13 }
 0x13a   : > { %v337_v2 = vsel %vm333_vm14, %v324_v44, %v336_v48  ;;  %v685_v53 = vpop.permute.xlu0 %684 }
 0x13b   : > { %v1857_v3 = vcombine.high %v334_v1, %v337_v2  ;;  %v1856_v50 = vcombine.low %v334_v1, %v337_v2 }
 0x13d   : > { %658 = vrot.lane.b32.xlu1 %v1857_v3, %s2011_s13  ;;  %652 = vrot.lane.b32.xlu0 %v1854_v4, %s2011_s13 }
 0x13e   : > { %v673_v54 = vpop.permute.xlu0 %672 }
 0x141   : > { %656 = vrot.lane.b32.xlu1 %v1856_v50, %s2011_s13  ;;  %650 = vrot.lane.b32.xlu0 %v1853_v51, %s2011_s13 }
 0x142   : > { %v661_v9 = vpop.permute.xlu0 %660 }
 0x145   : > { %654 = vrot.lane.b32.xlu1 %v2250_v55, %s2011_s13  ;;  %1004 = vperm.xlu0 %1955, %v996_v41  }
 0x149   : > { %999 = vperm.xlu1 %1954, %v995_v40  }
 0x187   : > { %v689_v11 = vpop.permute.xlu0 %688 }
 0x188   : > { %v706_v12 = vsel %vm692_vm15, %v689_v11, %v691_v8 }
 0x189   : > { %745 = vmatprep.subr.bf16.mxu0 %v706_v12 }
 0x18b   : > { %v687_v14 = vpop.permute.xlu0 %686 }
 0x18c   : > { %v705_v19 = vsel %vm692_vm15, %v687_v14, %v689_v11 }
 0x18d   : > { %746 = vmatpush1.bf16.msra.mxu0 %v705_v19 }
 0x18f   : > { %v683_v23 = vpop.permute.xlu1 %682 }
 0x190   : > { %v704_v15 = vsel %vm692_vm15, %v683_v23, %v685_v53 }
 0x191   : > { %747 = vmatprep.subr.bf16.mxu0 %v704_v15 }
 0x193   : > { %v681_v55 = vpop.permute.xlu1 %680 }
 0x194   : > { %v703_v16 = vsel %vm692_vm15, %v681_v55, %v683_v23 }
 0x195   : > { %748 = vmatpush1.bf16.msra.mxu0 %v703_v16 }
 0x197   : > { %v677_v17 = vpop.permute.xlu0 %676 }
 0x198   : > { %v702_v18 = vsel %vm692_vm15, %v677_v17, %v679_v10 }
 0x199   : > { %749 = vmatprep.subr.bf16.mxu0 %v702_v18 }
 0x19b   : > { %v675_v20 = vpop.permute.xlu0 %674 }
 0x19c   : > { %v701_v21 = vsel %vm692_vm15, %v675_v20, %v677_v17 }
 0x19d   : > { %750 = vmatpush1.bf16.msra.mxu0 %v701_v21 }
 0x19f   : > { %v671_v22 = vpop.permute.xlu1 %670 }
 0x1a0   : > { %v700_v24 = vsel %vm692_vm15, %v671_v22, %v673_v54 }
 0x1a1   : > { %751 = vmatprep.subr.bf16.mxu0 %v700_v24 }
 0x1a3   : > { %v669_v25 = vpop.permute.xlu1 %668 }
 0x1a4   : > { %v699_v26 = vsel %vm692_vm15, %v669_v25, %v671_v22 }
 0x1a5   : > { %752 = vmatpush1.bf16.msra.mxu0 %v699_v26 }
 0x1a7   : > { %v665_v27 = vpop.permute.xlu0 %664 }
 0x1a8   : > { %v698_v28 = vsel %vm692_vm15, %v665_v27, %v667_v13 }
 0x1a9   : > { %753 = vmatprep.subr.bf16.mxu0 %v698_v28 }
 0x1ab   : > { %v663_v29 = vpop.permute.xlu0 %662 }
 0x1ac   : > { %v697_v30 = vsel %vm692_vm15, %v663_v29, %v665_v27 }
 0x1ad   : > { %754 = vmatpush1.bf16.msra.mxu0 %v697_v30 }
 0x1af   : > { %v659_v33 = vpop.permute.xlu1 %658  ;;  %v653_v36 = vpop.permute.xlu0 %652 }
 0x1b0   : > { %v696_v39 = vsel %vm692_vm15, %v659_v33, %v661_v9 }
 0x1b1   : > { %755 = vmatprep.subr.bf16.mxu0 %v696_v39 }
 0x1b3   : > { %v657_v31 = vpop.permute.xlu1 %656  ;;  %v651_v42 = vpop.permute.xlu0 %650 }
 0x1b4   : > { %v695_v32 = vsel %vm692_vm15, %v657_v31, %v659_v33  ;;  %v693_v43 = vsel %vm692_vm15, %v651_v42, %v653_v36 }
 0x1b5   : > { %756 = vmatpush1.bf16.msra.mxu0 %v695_v32 }
 0x1b7   : > { %v655_v34 = vpop.permute.xlu1 %654 }
 0x1b8   : > { %v694_v35 = vsel %vm692_vm15, %v653_v36, %v655_v34 }
 0x1b9   : > { %757 = vmatprep.subr.bf16.mxu0 %v694_v35 }
 0x1ba   : > { %758 = vmatpush1.bf16.msra.mxu0 %v693_v43 }
 0x1bd   : > { %1874 = vmatmul.mubr.msk.bf16.vlgmr.msra.gmra.mxu0 %vm721_vm1, %v1963_v46 }
 0x1be   : > { %785 = vmatprep.mubr.bf16.mxu0 %v2000_v0 }
 0x1c0   : > { %v1005_v27 = vpop.permute.xlu0 %1004 }
 0x1c4   : > { %v1000_v25 = vpop.permute.xlu1 %999 }
 0x1c5   : > { %1875 = vmatmul.mubr.msk.bf16.gmra.mxu0 %vm721_vm1, %v1964_v49 }
 0x1c6   : > { %795 = vmatprep.mubr.bf16.mxu0 %v2000_v0 }
 0x1cd   : > { %1876 = vmatmul.mubr.msk.bf16.gmra.mxu0 %vm721_vm1, %v1965_v52 }
 0x1ce   : > { %805 = vmatprep.mubr.bf16.mxu0 %v2000_v0 }
 0x1d5   : > { %1877 = vmatmul.mubr.msk.bf16.gmra.mxu0 %vm721_vm1, %v1966_v56 }
 0x1d6   : > { %815 = vmatprep.mubr.bf16.mxu0 %v2000_v0 }
 0x1dd   : > { %1878 = vmatmul.mubr.msk.bf16.gmra.mxu0 %vm721_vm1, %v1967_v37 }
 0x1de   : > { %825 = vmatprep.mubr.bf16.mxu0 %v2000_v0 }
 0x1e5   : > { %1879 = vmatmul.mubr.msk.bf16.gmra.mxu0 %vm721_vm1, %v1968_v38 }
 0x1e6   : > { %835 = vmatprep.mubr.bf16.mxu0 %v2000_v0 }
 0x1ed   : > { %1880 = vmatmul.mubr.msk.bf16.gmra.mxu0 %vm721_vm1, %v1969_v57 }
 0x27d   : > { %v2392_v58 = vpop.f32.mrf.mxu0 }
 0x27f   : > { %v779_v59 = vpop.f32.mrf.mxu0 }
 0x281   : > { %v2394_v60 = vpop.f32.mrf.mxu0 }
 0x283   : > { %v783_v61 = vpop.f32.mrf.mxu0 }
 0x285   : > { %v787_v62 = vpop.f32.mrf.mxu0 }
 0x286   : > { %883 = vrot.lane.b32.xlu1 %v787_v62, %s2012_s19 }
 0x287   : > { %v789_v44 = vpop.f32.mrf.mxu0 }
 0x289   : > { %v791_v45 = vpop.f32.mrf.mxu0 }
 0x28a   : > { %885 = vrot.lane.b32.xlu0 %v791_v45, %s2012_s19 }
 0x28b   : > { %v793_v63 = vpop.f32.mrf.mxu0 }
 0x28d   : > { %v797_v47 = vpop.f32.mrf.mxu0 }
 0x28e   : > { %895 = vrot.lane.b32.xlu1 %v797_v47, %s2004_s30 }
 0x28f   : > { %v799_v48 = vpop.f32.mrf.mxu0 }
 0x291   : > { %v801_v1 = vpop.f32.mrf.mxu0 }
 0x292   : > { %897 = vrot.lane.b32.xlu0 %v801_v1, %s2004_s30 }
 0x293   : > { %v803_v2 = vpop.f32.mrf.mxu0 }
 0x295   : > { %v807_v3 = vpop.f32.mrf.mxu0 }
 0x296   : > { %911 = vrot.lane.b32.xlu1 %v807_v3, %s2013_s20 }
 0x297   : > { %v809_v4 = vpop.f32.mrf.mxu0 }
 0x298   : > { %860 = vst.msk [vmem:[#allocation4 + $0x68] sm:$0xff] %vm847_vm2, %v809_v4 }
 0x299   : > { %v811_v50 = vpop.f32.mrf.mxu0 }
 0x29a   : > { %915 = vrot.lane.b32.xlu1 %v811_v50, %s2013_s20 }
 0x29b   : > { %v813_v51 = vpop.f32.mrf.mxu0 }
 0x29c   : > { %862 = vst.msk [vmem:[#allocation4 + $0x78] sm:$0xff] %vm847_vm2, %v813_v51 }
 0x29d   : > { %v817_v53 = vpop.f32.mrf.mxu0 }
 0x29e   : > { %934 = vrot.lane.b32.xlu1 %v817_v53, %s2014_s24 }
 0x29f   : > { %v819_v54 = vpop.f32.mrf.mxu0  ;;  %v904_v8 = vld [vmem:[#allocation4 + $0x68] sm:$0xff] }
 0x2a0   : > { %864 = vst.msk [vmem:[#allocation4 + $0x88] sm:$0xff] %vm847_vm2, %v819_v54  ;;  %913 = vrot.lane.b32.xlu0 %v904_v8, %s2013_s20 }
 0x2a1   : > { %v821_v9 = vpop.f32.mrf.mxu0 }
 0x2a2   : > { %938 = vrot.lane.b32.xlu1 %v821_v9, %s2014_s24 }
 0x2a3   : > { %v823_v10 = vpop.f32.mrf.mxu0  ;;  %v906_v11 = vld [vmem:[#allocation4 + $0x78] sm:$0xff] }
 0x2a4   : > { %866 = vst.msk [vmem:[#allocation4 + $0x98] sm:$0xff] %vm847_vm2, %v823_v10  ;;  %917 = vrot.lane.b32.xlu0 %v906_v11, %s2013_s20 }
 0x2a5   : > { %v827_v12 = vpop.f32.mrf.mxu0 }
 0x2a6   : > { %957 = vrot.lane.b32.xlu1 %v827_v12, %s2015_s25 }
 0x2a7   : > { %v829_v13 = vpop.f32.mrf.mxu0  ;;  %v927_v14 = vld [vmem:[#allocation4 + $0x88] sm:$0xff] }
 0x2a8   : > { %868 = vst.msk [vmem:[#allocation4 + $0xa8] sm:$0xff] %vm847_vm2, %v829_v13  ;;  %936 = vrot.lane.b32.xlu0 %v927_v14, %s2014_s24 }
 0x2a9   : > { %v831_v19 = vpop.f32.mrf.mxu0 }
 0x2aa   : > { %961 = vrot.lane.b32.xlu1 %v831_v19, %s2015_s25 }
 0x2ab   : > { %v833_v23 = vpop.f32.mrf.mxu0  ;;  %v929_v15 = vld [vmem:[#allocation4 + $0x98] sm:$0xff] }
 0x2ac   : > { %870 = vst.msk [vmem:[#allocation4 + $0xb8] sm:$0xff] %vm847_vm2, %v833_v23  ;;  %940 = vrot.lane.b32.xlu0 %v929_v15, %s2014_s24 }
 0x2ad   : > { %v837_v55 = vpop.f32.mrf.mxu0 }
 0x2ae   : > { %980 = vrot.lane.b32.xlu1 %v837_v55, %s2016_s26 }
 0x2af   : > { %v839_v16 = vpop.f32.mrf.mxu0  ;;  %v950_v17 = vld [vmem:[#allocation4 + $0xa8] sm:$0xff] }
 0x2b0   : > { %872 = vst.msk [vmem:[#allocation4 + $0xc8] sm:$0xff] %vm847_vm2, %v839_v16  ;;  %959 = vrot.lane.b32.xlu0 %v950_v17, %s2015_s25 }
 0x2b1   : > { %v841_v18 = vpop.f32.mrf.mxu0 }
 0x2b3   : > { %v843_v20 = vpop.f32.mrf.mxu0  ;;  %v952_v21 = vld [vmem:[#allocation4 + $0xb8] sm:$0xff] }
 0x2b4   : > { %874 = vst.msk [vmem:[#allocation4 + $0xd8] sm:$0xff] %vm847_vm2, %v843_v20  ;;  %963 = vrot.lane.b32.xlu0 %v952_v21, %s2015_s25 }
 0x2b7   : > { %v973_v22 = vld [vmem:[#allocation4 + $0xc8] sm:$0xff] }
 0x2b8   : > { %982 = vrot.lane.b32.xlu1 %v973_v22, %s2016_s26  ;;  %984 = vrot.lane.b32.xlu0 %v841_v18, %s2016_s26 }
 0x2bb   : > { %v975_v24 = vld [vmem:[#allocation4 + $0xd8] sm:$0xff] }
 0x2bc   : > { %986 = vrot.lane.b32.xlu1 %v975_v24, %s2016_s26 }
 0x2f8   : > { %v884_v26 = vpop.permute.xlu1 %883 }
 0x2f9   : > { %v889_v49 = vadd.f32 %v884_v26, %v2392_v58 }
 0x2fc   : > { %v886_v30 = vpop.permute.xlu0 %885 }
 0x2fd   : > { %v890_v57 = vadd.f32 %v886_v30, %v2394_v60 }
 0x300   : > { %v896_v28 = vpop.permute.xlu1 %895 }
 0x301   : > { %v901_v37 = vadd.f32 %v896_v28, %v889_v49 }
 0x304   : > { %v898_v36 = vpop.permute.xlu0 %897 }
 0x305   : > { %v902_v62 = vadd.f32 %v898_v36, %v890_v57 }
 0x308   : > { %v912_v29 = vpop.permute.xlu1 %911 }
 0x30c   : > { %v916_v33 = vpop.permute.xlu1 %915 }
 0x310   : > { %v935_v39 = vpop.permute.xlu1 %934 }
 0x312   : > { %v914_v31 = vpop.permute.xlu0 %913 }
 0x313   : > { %v920_v56 = vsel %vm919_vm3, %v912_v29, %v914_v31 }
 0x314   : > { %v939_v32 = vpop.permute.xlu1 %938  ;;  %v924_v40 = vadd.f32 %v920_v56, %v901_v37 }
 0x316   : > { %v918_v42 = vpop.permute.xlu0 %917 }
 0x317   : > { %v921_v59 = vsel %vm919_vm3, %v916_v33, %v918_v42 }
 0x318   : > { %v958_v35 = vpop.permute.xlu1 %957  ;;  %v925_v63 = vadd.f32 %v921_v59, %v902_v62 }
 0x31a   : > { %v937_v34 = vpop.permute.xlu0 %936 }
 0x31b   : > { %v943_v38 = vsel %vm942_vm5, %v935_v39, %v937_v34 }
 0x31c   : > { %v962_v46 = vpop.permute.xlu1 %961  ;;  %v947_v44 = vadd.f32 %v943_v38, %v924_v40  ;;  %v2017_v40 = vmov -1.0  }
 0x31e   : > { %v941_v43 = vpop.permute.xlu0 %940 }
 0x31f   : > { %v944_v58 = vsel %vm942_vm5, %v939_v32, %v941_v43 }
 0x320   : > { %v981_v41 = vpop.permute.xlu1 %980  ;;  %v948_v60 = vadd.f32 %v944_v58, %v925_v63  ;;  %v2437_v63 = vld [vmem:[%s2763_s5] ss:$0 sm:$0xff] }
 0x322   : > { %v960_v52 = vpop.permute.xlu0 %959 }
 0x323   : > { %v966_v61 = vsel %vm965_vm6, %v958_v35, %v960_v52 }
 0x324   : > { %v970_v47 = vadd.f32 %v966_v61, %v947_v44 }
 0x326   : > { %v964_v45 = vpop.permute.xlu0 %963 }
 0x327   : > { %v967_v1 = vsel %vm965_vm6, %v962_v46, %v964_v45 }
 0x328   : > { %v971_v4 = vadd.f32 %v967_v1, %v948_v60 }
 0x32a   : > { %v983_v48 = vpop.permute.xlu1 %982  ;;  %v985_v51 = vpop.permute.xlu0 %984 }
 0x32b   : > { %v989_v2 = vsel %vm2765_vm7, %v981_v41, %v983_v48 }
 0x32c   : > { %v993_v3 = vadd.f32 %v989_v2, %v970_v47 }
 0x32e   : > { %v1007_v50 = vadd.f32 %v1000_v25, %v993_v3  ;;  %v987_v53 = vpop.permute.xlu1 %986 }
 0x32f   : > { %v990_v54 = vsel %vm2765_vm7, %v985_v51, %v987_v53 }
 0x330   : > { %v1012_v8 = vmul.f32 0.70710677, %v1007_v50  ;;  %v994_v9 = vadd.f32 %v990_v54, %v971_v4  ;;  %v1009_v62 = vmul.f32 0.5, %v1007_v50 }
 0x332   : > { %v1018_v10 = vand.u32 2147483647, %v1012_v8  ;;  %v1008_v11 = vadd.f32 %v1005_v27, %v994_v9  ;;  %vm1014_vm8 = vcmp.ge.f32.partialorder %v1012_v8, 0.0 }
 0x333   : > { %v1016_v41 = vsel %vm1014_vm8, 1.0, %v2017_v40 }
 0x334   : > { %v1020_v12 = vmul.f32 0.3275911, %v1018_v10  ;;  %v1013_v13 = vmul.f32 0.70710677, %v1008_v11  ;;  %v1046_v55 = vsub.f32 0.0, %v1018_v10  ;;  %v1010_v1 = vmul.f32 0.5, %v1008_v11 }
 0x336   : > { %v1022_v14 = vadd.f32 1.0, %v1020_v12  ;;  %v1019_v19 = vand.u32 2147483647, %v1013_v13  ;;  %v1048_v16 = vmul.f32 %v1046_v55, %v1018_v10  ;;  %vm1015_vm7 = vcmp.ge.f32.partialorder %v1013_v13, 0.0 }
 0x337   : > { %v1017_v58 = vsel %vm1015_vm7, 1.0, %v2017_v40  ;;  %vm1084_vm7 = vcmask 912640  }
 0x338   : > { %1984 = vrcp.f32 %v1022_v14  ;;  %v1021_v23 = vmul.f32 0.3275911, %v1019_v19  ;;  %v1047_v17 = vsub.f32 0.0, %v1019_v19  ;;  %v1050_v20 = vmul.f32 1.442695, %v1048_v16 }
 0x33a   : > { %v1023_v15 = vadd.f32 1.0, %v1021_v23  ;;  %v1049_v21 = vmul.f32 %v1047_v17, %v1019_v19 }
 0x33c   : > { %1986 = vrcp.f32 %v1023_v15  ;;  %v1052_v26 = vmul.f32 1.442695, %v1049_v21 }
 0x33d   : > { %1988 = vpow2.f32 %v1050_v20 }
 0x33e   : > { %1990 = vpow2.f32 %v1052_v26 }
 0x345   : > { %v1985_v18 = vpop.eup %1984 }
 0x346   : > { %v1028_v22 = vmul.f32 1.0614054, %v1985_v18 }
 0x348   : > { %v1030_v24 = vadd.f32 -1.4531521, %v1028_v22 }
 0x349   : > { %v1987_v25 = vpop.eup %1986 }
 0x34a   : > { %v1032_v27 = vmul.f32 %v1985_v18, %v1030_v24  ;;  %v1029_v28 = vmul.f32 1.0614054, %v1987_v25  ;;  %v1989_v49 = vpop.eup %1988 }
 0x34b   : > { %v1991_v57 = vpop.eup %1990 }
 0x34c   : > { %v1034_v29 = vadd.f32 1.4214138, %v1032_v27  ;;  %v1031_v30 = vadd.f32 -1.4531521, %v1029_v28 }
 0x34e   : > { %v1036_v33 = vmul.f32 %v1985_v18, %v1034_v29  ;;  %v1033_v36 = vmul.f32 %v1987_v25, %v1031_v30 }
 0x350   : > { %v1038_v39 = vadd.f32 -0.28449672, %v1036_v33  ;;  %v1035_v31 = vadd.f32 1.4214138, %v1033_v36 }
 0x352   : > { %v1040_v32 = vmul.f32 %v1985_v18, %v1038_v39  ;;  %v1037_v42 = vmul.f32 %v1987_v25, %v1035_v31 }
 0x354   : > { %v1042_v34 = vadd.f32 0.2548296, %v1040_v32  ;;  %v1039_v35 = vadd.f32 -0.28449672, %v1037_v42 }
 0x356   : > { %v1044_v43 = vmul.f32 %v1985_v18, %v1042_v34  ;;  %v1041_v46 = vmul.f32 %v1987_v25, %v1039_v35 }
 0x358   : > { %v1054_v52 = vmul.f32 %v1989_v49, %v1044_v43  ;;  %v1043_v56 = vadd.f32 0.2548296, %v1041_v46 }
 0x35a   : > { %v1056_v37 = vsub.f32 1.0, %v1054_v52  ;;  %v1045_v38 = vmul.f32 %v1987_v25, %v1043_v56 }
 0x35c   : > { %v1058_v59 = vmul.f32 %v1056_v37, %v1016_v41  ;;  %v1055_v61 = vmul.f32 %v1991_v57, %v1045_v38 }
 0x35e   : > { %v1060_v44 = vadd.f32 1.0, %v1058_v59  ;;  %v1057_v45 = vsub.f32 1.0, %v1055_v61 }
 0x360   : > { %v1062_v47 = vmul.f32 %v1060_v44, %v1009_v62  ;;  %v1059_v48 = vmul.f32 %v1057_v45, %v1017_v58 }
 0x362   : > { %v1070_v2 = vmul.f32 %v2437_v63, %v1062_v47  ;;  %v1061_v60 = vadd.f32 1.0, %v1059_v48 }
 0x364   : > { %v1925_v3 = vpack.c.bf16 %v1070_v2, %v1070_v2  ;;  %v1063_v4 = vmul.f32 %v1061_v60, %v1010_v1 }
 0x366   : > { %1078 = vrot.lane.b32.xlu0 %v1925_v3, %s2018_s29  ;;  %v1071_v50 = vmul.f32 %v2437_v63, %v1063_v4 }
 0x368   : > { %v1926_v51 = vpack.c.bf16 %v1071_v50, %v1071_v50 }
 0x36a   : > { %1080 = vrot.lane.b32.xlu1 %v1926_v51, %s2018_s29 }
 0x36e   : > { %1231 = vrot.lane.b32.xlu1 %v2081_v5, %s2005_s7 }
 0x372   : > { %1235 = vrot.lane.b32.xlu1 %v2085_v6, %s2005_s7 }
 0x376   : > { %1205 = vrot.lane.b32.xlu1 %v2081_v5, %s2006_s8 }
 0x37a   : > { %1209 = vrot.lane.b32.xlu1 %v2085_v6, %s2006_s8 }
 0x37e   : > { %1179 = vrot.lane.b32.xlu1 %v2081_v5, %s2007_s9 }
 0x382   : > { %1183 = vrot.lane.b32.xlu1 %v2085_v6, %s2007_s9 }
 0x386   : > { %1153 = vrot.lane.b32.xlu1 %v2081_v5, %s2008_s10 }
 0x38a   : > { %1157 = vrot.lane.b32.xlu1 %v2085_v6, %s2008_s10 }
 0x38e   : > { %1127 = vrot.lane.b32.xlu1 %v2081_v5, %s2009_s11 }
 0x392   : > { %1131 = vrot.lane.b32.xlu1 %v2085_v6, %s2009_s11 }
 0x396   : > { %1101 = vrot.lane.b32.xlu1 %v2081_v5, %s2010_s12 }
 0x39a   : > { %1105 = vrot.lane.b32.xlu1 %v2085_v6, %s2010_s12 }
 0x3d8   : > { %v1079_v53 = vpop.permute.xlu0 %1078 }
 0x3d9   : > { %1085 = vst.msk [vmem:[#allocation2 + $0x4] sm:$0xf] %vm1084_vm7, %v1079_v53 }
 0x3dc   : > { %v1081_v54 = vpop.permute.xlu1 %1080 }
 0x3dd   : > { %1086 = vst.msk [vmem:[#allocation2 + $0x14] sm:$0xf] %vm1084_vm7, %v1081_v54 }
 0x3e0   : > { %v2465_v8 = vld [vmem:[#allocation2] sm:$0xff]  ;;  %v2467_v9 = vpop.permute.xlu1 %1231 }
 0x3e1   : > { %1229 = vrot.lane.b32.xlu0 %v2465_v8, %s2005_s7  ;;  %v1238_v10 = vrot.slane %v2467_v9, 4 }
 0x3e3   : > { %v1243_v5 = vsel %vm468_vm9, %v2467_v9, %v1238_v10 }
 0x3e4   : > { %v2476_v6 = vld [vmem:[#allocation2 + $0x10] sm:$0xff]  ;;  %1252 = vst.msk [vmem:[#allocation3 + $0xc8] sm:$0xff] %vm2106_vm4, %v1243_v5  ;;  %v2480_v11 = vpop.permute.xlu1 %1235 }
 0x3e5   : > { %1203 = vrot.lane.b32.xlu0 %v2465_v8, %s2006_s8  ;;  %v1240_v12 = vrot.slane %v2480_v11, 4  ;;  %v1892_v13 = vcombine.high %v2465_v8, %v2476_v6  ;;  %v1891_v14 = vcombine.low %v2465_v8, %v2476_v6 }
 0x3e7   : > { %v1246_v19 = vsel %vm468_vm9, %v2480_v11, %v1240_v12 }
 0x3e8   : > { %1254 = vst.msk [vmem:[#allocation3 + $0xd8] sm:$0xff] %vm2106_vm4, %v1246_v19  ;;  %v2495_v23 = vpop.permute.xlu1 %1205 }
 0x3e9   : > { %1177 = vrot.lane.b32.xlu0 %v2465_v8, %s2007_s9  ;;  %v1212_v15 = vrot.slane %v2495_v23, 4 }
 0x3eb   : > { %v1217_v55 = vsel %vm441_vm10, %v2495_v23, %v1212_v15 }
 0x3ec   : > { %1226 = vst.msk [vmem:[#allocation3 + $0xa8] sm:$0xff] %vm2106_vm4, %v1217_v55  ;;  %v2506_v16 = vpop.permute.xlu1 %1209 }
 0x3ed   : > { %1151 = vrot.lane.b32.xlu0 %v2465_v8, %s2008_s10  ;;  %v1214_v17 = vrot.slane %v2506_v16, 4 }
 0x3ef   : > { %v1220_v18 = vsel %vm441_vm10, %v2506_v16, %v1214_v17  ;;  %v1970_v20 = vld [vmem:[#allocation3 + $0xc8] ss:$16 sps:$4 sm:$0xff]  }
 0x3f0   : > { %1228 = vst.msk [vmem:[#allocation3 + $0xb8] sm:$0xff] %vm2106_vm4, %v1220_v18  ;;  %v2517_v21 = vpop.permute.xlu1 %1179  ;;  %1463 = vrot.lane.b32.xlu1 %v1970_v20, %s2011_s13 }
 0x3f1   : > { %1125 = vrot.lane.b32.xlu0 %v2465_v8, %s2009_s11  ;;  %v1186_v22 = vrot.slane %v2517_v21, 4 }
 0x3f3   : > { %v1191_v24 = vsel %vm414_vm11, %v2517_v21, %v1186_v22 }
 0x3f4   : > { %1200 = vst.msk [vmem:[#allocation3 + $0x88] sm:$0xff] %vm2106_vm4, %v1191_v24  ;;  %v2527_v25 = vpop.permute.xlu1 %1183 }
 0x3f5   : > { %1099 = vrot.lane.b32.xlu0 %v2465_v8, %s2010_s12  ;;  %v1188_v26 = vrot.slane %v2527_v25, 4 }
 0x3f7   : > { %v1194_v27 = vsel %vm414_vm11, %v2527_v25, %v1188_v26  ;;  %v1971_v38 = vld [vmem:[#allocation3 + $0xa8] ss:$16 sps:$4 sm:$0xff]  }
 0x3f8   : > { %1202 = vst.msk [vmem:[#allocation3 + $0x98] sm:$0xff] %vm2106_vm4, %v1194_v27  ;;  %v1154_v28 = vpop.permute.xlu1 %1153 }
 0x3f9   : > { %1233 = vrot.lane.b32.xlu0 %v2476_v6, %s2005_s7  ;;  %v1160_v29 = vrot.slane %v1154_v28, 4 }
 0x3fb   : > { %v1165_v30 = vsel %vm387_vm12, %v1154_v28, %v1160_v29 }
 0x3fc   : > { %1174 = vst.msk [vmem:[#allocation3 + $0x68] sm:$0xff] %vm2106_vm4, %v1165_v30  ;;  %v2543_v33 = vpop.permute.xlu1 %1157 }
 0x3fd   : > { %1207 = vrot.lane.b32.xlu0 %v2476_v6, %s2006_s8  ;;  %v1162_v36 = vrot.slane %v2543_v33, 4 }
 0x3ff   : > { %v1168_v39 = vsel %vm387_vm12, %v2543_v33, %v1162_v36  ;;  %v1972_v31 = vld [vmem:[#allocation3 + $0x88] ss:$16 sps:$4 sm:$0xff]  }
 0x400   : > { %1176 = vst.msk [vmem:[#allocation3 + $0x78] sm:$0xff] %vm2106_vm4, %v1168_v39  ;;  %v1128_v32 = vpop.permute.xlu1 %1127  ;;  %1451 = vrot.lane.b32.xlu1 %v1972_v31, %s2011_s13 }
 0x401   : > { %1181 = vrot.lane.b32.xlu0 %v2476_v6, %s2007_s9  ;;  %v1134_v42 = vrot.slane %v1128_v32, 4 }
 0x403   : > { %v1139_v34 = vsel %vm360_vm13, %v1128_v32, %v1134_v42 }
 0x404   : > { %1148 = vst.msk [vmem:[#allocation3 + $0x48] sm:$0xff] %vm2106_vm4, %v1139_v34  ;;  %v2560_v35 = vpop.permute.xlu1 %1131 }
 0x405   : > { %1155 = vrot.lane.b32.xlu0 %v2476_v6, %s2008_s10  ;;  %v1136_v43 = vrot.slane %v2560_v35, 4 }
 0x407   : > { %v1142_v46 = vsel %vm360_vm13, %v2560_v35, %v1136_v43  ;;  %v1973_v59 = vld [vmem:[#allocation3 + $0x68] ss:$16 sps:$4 sm:$0xff]  }
 0x408   : > { %1150 = vst.msk [vmem:[#allocation3 + $0x58] sm:$0xff] %vm2106_vm4, %v1142_v46  ;;  %v1102_v49 = vpop.permute.xlu1 %1101 }
 0x409   : > { %1129 = vrot.lane.b32.xlu0 %v2476_v6, %s2009_s11  ;;  %v1108_v52 = vrot.slane %v1102_v49, 4 }
 0x40b   : > { %v1113_v56 = vsel %vm333_vm14, %v1102_v49, %v1108_v52 }
 0x40c   : > { %1122 = vst.msk [vmem:[#allocation3 + $0x28] sm:$0xff] %vm2106_vm4, %v1113_v56  ;;  %v2576_v37 = vpop.permute.xlu1 %1105 }
 0x40d   : > { %1103 = vrot.lane.b32.xlu0 %v2476_v6, %s2010_s12  ;;  %v1110_v57 = vrot.slane %v2576_v37, 4 }
 0x40f   : > { %v1116_v40 = vsel %vm333_vm14, %v2576_v37, %v1110_v57  ;;  %v1974_v41 = vld [vmem:[#allocation3 + $0x48] ss:$16 sps:$4 sm:$0xff]  }
 0x410   : > { %1124 = vst.msk [vmem:[#allocation3 + $0x38] sm:$0xff] %vm2106_vm4, %v1116_v40  ;;  %1439 = vrot.lane.b32.xlu1 %v1974_v41, %s2011_s13  ;;  %v1976_v37 = vld [vmem:[#allocation3 + $0x8] ss:$16 sps:$4 sm:$0xff]   ;;  %vm1777_vm4 = vcmask 654336  }
 0x411   : > { %1457 = vrot.lane.b32.xlu0 %v1971_v38, %s2011_s13 }
 0x415   : > { %1445 = vrot.lane.b32.xlu0 %v1973_v59, %s2011_s13 }
 0x417   : > { %v1975_v61 = vld [vmem:[#allocation3 + $0x28] ss:$16 sps:$4 sm:$0xff]  }
 0x419   : > { %1433 = vrot.lane.b32.xlu0 %v1975_v61, %s2011_s13 }
 0x453   : > { %v1230_v62 = vpop.permute.xlu0 %1229 }
 0x454   : > { %v1237_v44 = vrot.slane %v1230_v62, 4 }
 0x456   : > { %v1241_v45 = vsel %vm254_vm0, %v1237_v44, %v1238_v10 }
 0x457   : > { %v1242_v58 = vsel %vm468_vm9, %v1230_v62, %v1241_v45  ;;  %v1204_v7 = vpop.permute.xlu0 %1203 }
 0x458   : > { %v1211_v47 = vrot.slane %v1204_v7, 4 }
 0x45a   : > { %v1215_v48 = vsel %vm254_vm0, %v1211_v47, %v1212_v15 }
 0x45b   : > { %v1216_v1 = vsel %vm441_vm10, %v1204_v7, %v1215_v48  ;;  %v1178_v2 = vpop.permute.xlu0 %1177  ;;  %v1762_v7 = vld [vmem:[%s2762_s4 + $0x8] sm:$0xff] }
 0x45c   : > { %v1185_v60 = vrot.slane %v1178_v2, 4 }
 0x45e   : > { %v1189_v3 = vsel %vm254_vm0, %v1185_v60, %v1186_v22 }
 0x45f   : > { %v1190_v4 = vsel %vm414_vm11, %v1178_v2, %v1189_v3  ;;  %v1152_v50 = vpop.permute.xlu0 %1151 }
 0x460   : > { %v1159_v51 = vrot.slane %v1152_v50, 4 }
 0x462   : > { %v1163_v53 = vsel %vm254_vm0, %v1159_v51, %v1160_v29 }
 0x463   : > { %v1164_v54 = vsel %vm387_vm12, %v1152_v50, %v1163_v53  ;;  %v1126_v9 = vpop.permute.xlu0 %1125 }
 0x464   : > { %v1133_v10 = vrot.slane %v1126_v9, 4 }
 0x466   : > { %v1137_v5 = vsel %vm254_vm0, %v1133_v10, %v1134_v42 }
 0x467   : > { %v1138_v19 = vsel %vm360_vm13, %v1126_v9, %v1137_v5  ;;  %v1100_v23 = vpop.permute.xlu0 %1099 }
 0x468   : > { %v1107_v15 = vrot.slane %v1100_v23, 4 }
 0x46a   : > { %v1111_v55 = vsel %vm254_vm0, %v1107_v15, %v1108_v52 }
 0x46b   : > { %v1112_v18 = vsel %vm333_vm14, %v1100_v23, %v1111_v55  ;;  %v1234_v20 = vpop.permute.xlu0 %1233 }
 0x46c   : > { %v1239_v21 = vrot.slane %v1234_v20, 4 }
 0x46e   : > { %v1244_v22 = vsel %vm254_vm0, %v1239_v21, %v1240_v12 }
 0x46f   : > { %v1245_v24 = vsel %vm468_vm9, %v1234_v20, %v1244_v22  ;;  %v1208_v27 = vpop.permute.xlu0 %1207 }
 0x470   : > { %v1213_v28 = vrot.slane %v1208_v27, 4  ;;  %v1910_v29 = vcombine.high %v1242_v58, %v1245_v24  ;;  %v1909_v42 = vcombine.low %v1242_v58, %v1245_v24 }
 0x472   : > { %v1218_v30 = vsel %vm254_vm0, %v1213_v28, %v1214_v17  ;;  %1461 = vrot.lane.b32.xlu0 %v1910_v29, %s2011_s13 }
 0x473   : > { %v1219_v39 = vsel %vm441_vm10, %v1208_v27, %v1218_v30  ;;  %v1182_v31 = vpop.permute.xlu0 %1181 }
 0x474   : > { %v1187_v32 = vrot.slane %v1182_v31, 4  ;;  %v1907_v34 = vcombine.high %v1216_v1, %v1219_v39  ;;  %v1906_v46 = vcombine.low %v1216_v1, %v1219_v39 }
 0x476   : > { %v1192_v11 = vsel %vm254_vm0, %v1187_v32, %v1188_v26  ;;  %1459 = vrot.lane.b32.xlu0 %v1909_v42, %s2011_s13  ;;  %1455 = vrot.lane.b32.xlu1 %v1907_v34, %s2011_s13  ;;  %v1977_v34 = vld [vmem:[%s2761_s3] sm:$0xff]  }
 0x477   : > { %v1193_v12 = vsel %vm414_vm11, %v1182_v31, %v1192_v11  ;;  %v1156_v16 = vpop.permute.xlu0 %1155  ;;  %v1978_v11 = vld [vmem:[%s2761_s3 + $0x8] sm:$0xff]  }
 0x478   : > { %v1161_v17 = vrot.slane %v1156_v16, 4  ;;  %v1904_v49 = vcombine.high %v1190_v4, %v1193_v12  ;;  %v1903_v38 = vcombine.low %v1190_v4, %v1193_v12  ;;  %v1979_v12 = vld [vmem:[%s2761_s3 + $0x10] sm:$0xff]  }
 0x47a   : > { %v1166_v52 = vsel %vm254_vm0, %v1161_v17, %v1162_v36  ;;  %1453 = vrot.lane.b32.xlu1 %v1906_v46, %s2011_s13  ;;  %1449 = vrot.lane.b32.xlu0 %v1904_v49, %s2011_s13  ;;  %v1981_v17 = vld [vmem:[%s2761_s3 + $0x20] sm:$0xff]   ;;  %v1982_v46 = vld [vmem:[%s2761_s3 + $0x28] sm:$0xff]  }
 0x47b   : > { %v1167_v25 = vsel %vm387_vm12, %v1156_v16, %v1166_v52  ;;  %v1130_v26 = vpop.permute.xlu0 %1129  ;;  %v1980_v16 = vld [vmem:[%s2761_s3 + $0x18] sm:$0xff]   ;;  %v1983_v49 = vld [vmem:[%s2761_s3 + $0x30] sm:$0xff]  }
 0x47c   : > { %v1135_v56 = vrot.slane %v1130_v26, 4  ;;  %v1901_v40 = vcombine.high %v1164_v54, %v1167_v25  ;;  %v1900_v61 = vcombine.low %v1164_v54, %v1167_v25 }
 0x47e   : > { %v1140_v41 = vsel %vm254_vm0, %v1135_v56, %v1136_v43  ;;  %1447 = vrot.lane.b32.xlu0 %v1903_v38, %s2011_s13  ;;  %1443 = vrot.lane.b32.xlu1 %v1901_v40, %s2011_s13 }
 0x47f   : > { %v1141_v33 = vsel %vm360_vm13, %v1130_v26, %v1140_v41  ;;  %v1104_v36 = vpop.permute.xlu0 %1103 }
 0x480   : > { %v1109_v59 = vrot.slane %v1104_v36, 4  ;;  %v1898_v62 = vcombine.high %v1138_v19, %v1141_v33  ;;  %v1897_v43 = vcombine.low %v1138_v19, %v1141_v33 }
 0x482   : > { %v1114_v44 = vsel %vm254_vm0, %v1109_v59, %v1110_v57  ;;  %1441 = vrot.lane.b32.xlu1 %v1900_v61, %s2011_s13  ;;  %1437 = vrot.lane.b32.xlu0 %v1898_v62, %s2011_s13  ;;  %v1761_v57 = vld [vmem:[%s2762_s4] sm:$0xff]  ;;  %vm2768_vm0 = vcmask 64512  }
 0x483   : > { %v1115_v35 = vsel %vm333_vm14, %v1104_v36, %v1114_v44  ;;  %v1458_v47 = vpop.permute.xlu0 %1457  ;;  %vm2769_vm9 = vmmov %vm2768_vm0 }
 0x484   : > { %v1895_v45 = vcombine.high %v1112_v18, %v1115_v35  ;;  %v1894_v58 = vcombine.low %v1112_v18, %v1115_v35 }
 0x486   : > { %1435 = vrot.lane.b32.xlu0 %v1897_v43, %s2011_s13  ;;  %1431 = vrot.lane.b32.xlu1 %v1895_v45, %s2011_s13 }
 0x487   : > { %v1446_v48 = vpop.permute.xlu0 %1445 }
 0x48a   : > { %1429 = vrot.lane.b32.xlu1 %v1894_v58, %s2011_s13  ;;  %1425 = vrot.lane.b32.xlu0 %v1892_v13, %s2011_s13  ;;  %v1464_v13 = vpop.permute.xlu1 %1463 }
 0x48b   : > { %v1434_v2 = vpop.permute.xlu0 %1433 }
 0x48e   : > { %1427 = vrot.lane.b32.xlu1 %v1976_v37, %s2011_s13  ;;  %1423 = vrot.lane.b32.xlu0 %v1891_v14, %s2011_s13  ;;  %v1452_v1 = vpop.permute.xlu1 %1451 }
 0x492   : > { %1765 = vperm.xlu1 %1954, %v1761_v57   ;;  %1770 = vperm.xlu0 %1955, %v1762_v7   ;;  %v1440_v60 = vpop.permute.xlu1 %1439 }
 0x4e4   : > { %v1462_v3 = vpop.permute.xlu0 %1461 }
 0x4e5   : > { %v1478_v8 = vsel %vm692_vm15, %v1462_v3, %v1464_v13 }
 0x4e6   : > { %1516 = vmatprep.subr.bf16.mxu1 %v1478_v8 }
 0x4e8   : > { %v1456_v6 = vpop.permute.xlu1 %1455  ;;  %v1460_v14 = vpop.permute.xlu0 %1459 }
 0x4e9   : > { %v1477_v4 = vsel %vm692_vm15, %v1460_v14, %v1462_v3  ;;  %v1476_v50 = vsel %vm692_vm15, %v1456_v6, %v1458_v47 }
 0x4ea   : > { %1517 = vmatpush1.bf16.msra.mxu1 %v1477_v4 }
 0x4eb   : > { %1518 = vmatprep.subr.bf16.mxu1 %v1476_v50 }
 0x4ec   : > { %v1454_v51 = vpop.permute.xlu1 %1453  ;;  %v1450_v53 = vpop.permute.xlu0 %1449 }
 0x4ed   : > { %v1475_v54 = vsel %vm692_vm15, %v1454_v51, %v1456_v6  ;;  %v1474_v9 = vsel %vm692_vm15, %v1450_v53, %v1452_v1 }
 0x4ee   : > { %1519 = vmatpush1.bf16.msra.mxu1 %v1475_v54 }
 0x4ef   : > { %1520 = vmatprep.subr.bf16.mxu1 %v1474_v9 }
 0x4f0   : > { %v1444_v10 = vpop.permute.xlu1 %1443  ;;  %v1448_v5 = vpop.permute.xlu0 %1447 }
 0x4f1   : > { %v1473_v19 = vsel %vm692_vm15, %v1448_v5, %v1450_v53  ;;  %v1472_v23 = vsel %vm692_vm15, %v1444_v10, %v1446_v48 }
 0x4f2   : > { %1521 = vmatpush1.bf16.msra.mxu1 %v1473_v19 }
 0x4f3   : > { %1522 = vmatprep.subr.bf16.mxu1 %v1472_v23 }
 0x4f4   : > { %v1442_v15 = vpop.permute.xlu1 %1441  ;;  %v1438_v55 = vpop.permute.xlu0 %1437 }
 0x4f5   : > { %v1471_v18 = vsel %vm692_vm15, %v1442_v15, %v1444_v10  ;;  %v1470_v20 = vsel %vm692_vm15, %v1438_v55, %v1440_v60 }
 0x4f6   : > { %1523 = vmatpush1.bf16.msra.mxu1 %v1471_v18 }
 0x4f7   : > { %1524 = vmatprep.subr.bf16.mxu1 %v1470_v20 }
 0x4f8   : > { %v1432_v21 = vpop.permute.xlu1 %1431  ;;  %v1436_v22 = vpop.permute.xlu0 %1435 }
 0x4f9   : > { %v1469_v24 = vsel %vm692_vm15, %v1436_v22, %v1438_v55  ;;  %v1468_v27 = vsel %vm692_vm15, %v1432_v21, %v1434_v2 }
 0x4fa   : > { %1525 = vmatpush1.bf16.msra.mxu1 %v1469_v24 }
 0x4fb   : > { %1526 = vmatprep.subr.bf16.mxu1 %v1468_v27 }
 0x4fc   : > { %v1430_v28 = vpop.permute.xlu1 %1429  ;;  %v1426_v29 = vpop.permute.xlu0 %1425 }
 0x4fd   : > { %v1467_v30 = vsel %vm692_vm15, %v1430_v28, %v1432_v21 }
 0x4fe   : > { %1527 = vmatpush1.bf16.msra.mxu1 %v1467_v30 }
 0x500   : > { %v1428_v39 = vpop.permute.xlu1 %1427  ;;  %v1424_v31 = vpop.permute.xlu0 %1423 }
 0x501   : > { %v1466_v32 = vsel %vm692_vm15, %v1426_v29, %v1428_v39  ;;  %v1465_v42 = vsel %vm692_vm15, %v1424_v31, %v1426_v29 }
 0x502   : > { %1528 = vmatprep.subr.bf16.mxu1 %v1466_v32 }
 0x503   : > { %1529 = vmatpush1.bf16.msra.mxu1 %v1465_v42 }
 0x506   : > { %1912 = vmatmul.mubr.msk.bf16.vlgmr.msra.gmra.mxu1 %vm721_vm1, %v1977_v34 }
 0x507   : > { %1556 = vmatprep.mubr.bf16.mxu1 %v2000_v0 }
 0x50d   : > { %v1766_v9 = vpop.permute.xlu1 %1765  ;;  %v1771_v19 = vpop.permute.xlu0 %1770 }
 0x50e   : > { %1913 = vmatmul.mubr.msk.bf16.gmra.mxu1 %vm721_vm1, %v1978_v11 }
 0x50f   : > { %1566 = vmatprep.mubr.bf16.mxu1 %v2000_v0 }
 0x516   : > { %1914 = vmatmul.mubr.msk.bf16.gmra.mxu1 %vm721_vm1, %v1979_v12 }
 0x517   : > { %1576 = vmatprep.mubr.bf16.mxu1 %v2000_v0 }
 0x51e   : > { %1915 = vmatmul.mubr.msk.bf16.gmra.mxu1 %vm721_vm1, %v1980_v16 }
 0x51f   : > { %1586 = vmatprep.mubr.bf16.mxu1 %v2000_v0 }
 0x526   : > { %1916 = vmatmul.mubr.msk.bf16.gmra.mxu1 %vm721_vm1, %v1981_v17 }
 0x527   : > { %1596 = vmatprep.mubr.bf16.mxu1 %v2000_v0 }
 0x52e   : > { %1917 = vmatmul.mubr.msk.bf16.gmra.mxu1 %vm721_vm1, %v1982_v46 }
 0x52f   : > { %1606 = vmatprep.mubr.bf16.mxu1 %v2000_v0 }
 0x536   : > { %1918 = vmatmul.mubr.msk.bf16.gmra.mxu1 %vm721_vm1, %v1983_v49 }
 0x5c6   : > { %v2706_v52 = vpop.f32.mrf.mxu1 }
 0x5c8   : > { %v1550_v25 = vpop.f32.mrf.mxu1 }
 0x5ca   : > { %v2708_v26 = vpop.f32.mrf.mxu1 }
 0x5cc   : > { %v1554_v56 = vpop.f32.mrf.mxu1 }
 0x5ce   : > { %v1558_v38 = vpop.f32.mrf.mxu1 }
 0x5cf   : > { %1653 = vrot.lane.b32.xlu1 %v1558_v38, %s2012_s19 }
 0x5d0   : > { %v1560_v40 = vpop.f32.mrf.mxu1 }
 0x5d2   : > { %v1562_v41 = vpop.f32.mrf.mxu1 }
 0x5d3   : > { %1655 = vrot.lane.b32.xlu0 %v1562_v41, %s2012_s19 }
 0x5d4   : > { %v1564_v0 = vpop.f32.mrf.mxu1 }
 0x5d6   : > { %v1568_v33 = vpop.f32.mrf.mxu1 }
 0x5d7   : > { %1665 = vrot.lane.b32.xlu1 %v1568_v33, %s2004_s30 }
 0x5d8   : > { %v1570_v36 = vpop.f32.mrf.mxu1 }
 0x5da   : > { %v1572_v59 = vpop.f32.mrf.mxu1 }
 0x5db   : > { %1667 = vrot.lane.b32.xlu0 %v1572_v59, %s2004_s30 }
 0x5dc   : > { %v1574_v61 = vpop.f32.mrf.mxu1 }
 0x5de   : > { %v1578_v62 = vpop.f32.mrf.mxu1 }
 0x5df   : > { %1681 = vrot.lane.b32.xlu1 %v1578_v62, %s2013_s20 }
 0x5e0   : > { %v1580_v44 = vpop.f32.mrf.mxu1 }
 0x5e1   : > { %1630 = vst.msk [vmem:[#allocation4 + $0x68] sm:$0xff] %vm847_vm2, %v1580_v44 }
 0x5e2   : > { %v1582_v35 = vpop.f32.mrf.mxu1 }
 0x5e3   : > { %1685 = vrot.lane.b32.xlu1 %v1582_v35, %s2013_s20 }
 0x5e4   : > { %v1584_v43 = vpop.f32.mrf.mxu1 }
 0x5e5   : > { %1632 = vst.msk [vmem:[#allocation4 + $0x78] sm:$0xff] %vm847_vm2, %v1584_v43 }
 0x5e6   : > { %v1588_v45 = vpop.f32.mrf.mxu1 }
 0x5e7   : > { %1703 = vrot.lane.b32.xlu1 %v1588_v45, %s2014_s24 }
 0x5e8   : > { %v1590_v58 = vpop.f32.mrf.mxu1  ;;  %v1674_v37 = vld [vmem:[#allocation4 + $0x68] sm:$0xff] }
 0x5e9   : > { %1634 = vst.msk [vmem:[#allocation4 + $0x88] sm:$0xff] %vm847_vm2, %v1590_v58  ;;  %1683 = vrot.lane.b32.xlu0 %v1674_v37, %s2013_s20 }
 0x5ea   : > { %v1592_v57 = vpop.f32.mrf.mxu1 }
 0x5eb   : > { %1707 = vrot.lane.b32.xlu1 %v1592_v57, %s2014_s24 }
 0x5ec   : > { %v1594_v7 = vpop.f32.mrf.mxu1  ;;  %v1676_v47 = vld [vmem:[#allocation4 + $0x78] sm:$0xff] }
 0x5ed   : > { %1636 = vst.msk [vmem:[#allocation4 + $0x98] sm:$0xff] %vm847_vm2, %v1594_v7  ;;  %1687 = vrot.lane.b32.xlu0 %v1676_v47, %s2013_s20  ;;  %s251_s20 = scalar_lea.vmem %s2764_s6, %s1921_s23 }
 0x5ee   : > { %v1598_v13 = vpop.f32.mrf.mxu1 }
 0x5ef   : > { %1725 = vrot.lane.b32.xlu1 %v1598_v13, %s2015_s25 }
 0x5f0   : > { %v1600_v48 = vpop.f32.mrf.mxu1  ;;  %v1696_v1 = vld [vmem:[#allocation4 + $0x88] sm:$0xff] }
 0x5f1   : > { %1638 = vst.msk [vmem:[#allocation4 + $0xa8] sm:$0xff] %vm847_vm2, %v1600_v48  ;;  %1705 = vrot.lane.b32.xlu0 %v1696_v1, %s2014_s24 }
 0x5f2   : > { %v1602_v2 = vpop.f32.mrf.mxu1 }
 0x5f3   : > { %1729 = vrot.lane.b32.xlu1 %v1602_v2, %s2015_s25 }
 0x5f4   : > { %v1604_v60 = vpop.f32.mrf.mxu1  ;;  %v1698_v3 = vld [vmem:[#allocation4 + $0x98] sm:$0xff] }
 0x5f5   : > { %1640 = vst.msk [vmem:[#allocation4 + $0xb8] sm:$0xff] %vm847_vm2, %v1604_v60  ;;  %1709 = vrot.lane.b32.xlu0 %v1698_v3, %s2014_s24 }
 0x5f6   : > { %v1608_v8 = vpop.f32.mrf.mxu1 }
 0x5f7   : > { %1747 = vrot.lane.b32.xlu1 %v1608_v8, %s2016_s26 }
 0x5f8   : > { %v1610_v6 = vpop.f32.mrf.mxu1  ;;  %v1718_v14 = vld [vmem:[#allocation4 + $0xa8] sm:$0xff] }
 0x5f9   : > { %1642 = vst.msk [vmem:[#allocation4 + $0xc8] sm:$0xff] %vm847_vm2, %v1610_v6  ;;  %1727 = vrot.lane.b32.xlu0 %v1718_v14, %s2015_s25 }
 0x5fa   : > { %v1612_v4 = vpop.f32.mrf.mxu1 }
 0x5fb   : > { %1751 = vrot.lane.b32.xlu1 %v1612_v4, %s2016_s26 }
 0x5fc   : > { %v1614_v50 = vpop.f32.mrf.mxu1  ;;  %v1720_v51 = vld [vmem:[#allocation4 + $0xb8] sm:$0xff] }
 0x5fd   : > { %1644 = vst.msk [vmem:[#allocation4 + $0xd8] sm:$0xff] %vm847_vm2, %v1614_v50  ;;  %1731 = vrot.lane.b32.xlu0 %v1720_v51, %s2015_s25 }
 0x600   : > { %v1740_v53 = vld [vmem:[#allocation4 + $0xc8] sm:$0xff] }
 0x601   : > { %1749 = vrot.lane.b32.xlu0 %v1740_v53, %s2016_s26 }
 0x604   : > { %v1742_v54 = vld [vmem:[#allocation4 + $0xd8] sm:$0xff] }
 0x605   : > { %1753 = vrot.lane.b32.xlu0 %v1742_v54, %s2016_s26 }
 0x641   : > { %v1654_v10 = vpop.permute.xlu1 %1653 }
 0x642   : > { %v1659_v30 = vadd.f32 %v1654_v10, %v2706_v52 }
 0x645   : > { %v1656_v15 = vpop.permute.xlu0 %1655 }
 0x646   : > { %v1660_v11 = vadd.f32 %v1656_v15, %v2708_v26 }
 0x649   : > { %v1666_v5 = vpop.permute.xlu1 %1665 }
 0x64a   : > { %v1671_v42 = vadd.f32 %v1666_v5, %v1659_v30 }
 0x64d   : > { %v1668_v18 = vpop.permute.xlu0 %1667 }
 0x64e   : > { %v1672_v49 = vadd.f32 %v1668_v18, %v1660_v11 }
 0x651   : > { %v1682_v23 = vpop.permute.xlu1 %1681 }
 0x655   : > { %v1686_v55 = vpop.permute.xlu1 %1685 }
 0x659   : > { %v1704_v20 = vpop.permute.xlu1 %1703 }
 0x65b   : > { %v1684_v21 = vpop.permute.xlu0 %1683 }
 0x65c   : > { %v1689_v32 = vsel %vm919_vm3, %v1682_v23, %v1684_v21 }
 0x65d   : > { %v1708_v24 = vpop.permute.xlu1 %1707  ;;  %v1693_v12 = vadd.f32 %v1689_v32, %v1671_v42 }
 0x65f   : > { %v1688_v22 = vpop.permute.xlu0 %1687 }
 0x660   : > { %v1690_v17 = vsel %vm919_vm3, %v1686_v55, %v1688_v22 }
 0x661   : > { %v1726_v28 = vpop.permute.xlu1 %1725  ;;  %v1694_v38 = vadd.f32 %v1690_v17, %v1672_v49 }
 0x663   : > { %v1706_v27 = vpop.permute.xlu0 %1705 }
 0x664   : > { %v1711_v34 = vsel %vm942_vm5, %v1704_v20, %v1706_v27 }
 0x665   : > { %v1730_v31 = vpop.permute.xlu1 %1729  ;;  %v1715_v25 = vadd.f32 %v1711_v34, %v1693_v12 }
 0x667   : > { %v1710_v29 = vpop.permute.xlu0 %1709 }
 0x668   : > { %v1712_v52 = vsel %vm942_vm5, %v1708_v24, %v1710_v29 }
 0x669   : > { %v1748_v56 = vpop.permute.xlu1 %1747  ;;  %v1716_v26 = vadd.f32 %v1712_v52, %v1694_v38 }
 0x66b   : > { %v1728_v39 = vpop.permute.xlu0 %1727 }
 0x66c   : > { %v1733_v46 = vsel %vm965_vm6, %v1726_v28, %v1728_v39 }
 0x66d   : > { %v1737_v40 = vadd.f32 %v1733_v46, %v1715_v25  ;;  %v1752_v62 = vpop.permute.xlu1 %1751 }
 0x66f   : > { %v1732_v16 = vpop.permute.xlu0 %1731 }
 0x670   : > { %v1734_v0 = vsel %vm965_vm6, %v1730_v31, %v1732_v16 }
 0x671   : > { %v1738_v59 = vadd.f32 %v1734_v0, %v1716_v26 }
 0x673   : > { %v1750_v41 = vpop.permute.xlu0 %1749 }
 0x674   : > { %v1755_v33 = vsel %vm2768_vm0, %v1748_v56, %v1750_v41 }
 0x675   : > { %v1759_v36 = vadd.f32 %v1755_v33, %v1737_v40 }
 0x677   : > { %v1773_v61 = vadd.f32 %v1766_v9, %v1759_v36  ;;  %v1754_v44 = vpop.permute.xlu0 %1753 }
 0x678   : > { %v1756_v35 = vsel %vm2769_vm9, %v1752_v62, %v1754_v44 }
 0x679   : > { %v1775_v43 = vmul.f32 %v2437_v63, %v1773_v61  ;;  %v1760_v45 = vadd.f32 %v1756_v35, %v1738_v59 }
 0x67b   : > { %1778 = vst.msk [vmem:[%s251_s20] sm:$0xff] %vm1777_vm4, %v1775_v43  ;;  %v1774_v58 = vadd.f32 %v1771_v19, %v1760_v45 }
 0x67d   : > { %v1776_v37 = vmul.f32 %v2437_v63, %v1774_v58 }
 0x67f   : > { %1779 = vst.msk [vmem:[%s251_s20 + $0x8] sm:$0xff] %vm1777_vm4, %v1776_v37 }
 0x680 PF: > { %s16_s21 = sadd.s32 1, %s1998_s21  }
 0x681   : > { %p13_p4 = scmp.ge.s32.totalorder %s16_s21, 4  }
 0x683   :  { %15 = sbr.rel (!%p13_p4) target bundleno = 1 (0x1), region = 74 }

</bundles_post_ra>
